<compile_context>
chip_gen: v7x
topology: tpu7x:2x2x1
jax: 0.10.0
libtpu: 0.0.40
codegen_flags: <defaults>
</compile_context>

<pallas_src>
import functools

import jax
import jax.numpy as jnp
from jax import lax
from jax.experimental import pallas as pl
from jax.experimental.pallas import tpu as pltpu


def _round_up(n, m):
    return (n + m - 1) // m * m


def _dlstm_recurrence_kernel(pre_ref, u_ref, hseq_ref, h_out_ref, c_out_ref,
                             h_sc, c_sc, *, tc, h_pad, t_valid, unroll):
    """Recurrent part of the DLSTM over one chunk of Tc timesteps.

    pre_ref   : (1, Tc, Bs, 4*Hp)  precomputed x-projections (x@W + b, with
                                   (x_t - x_{t-1})@Wd folded into the o slab).
    u_ref     : (Hp, 4*Hp)         recurrent weights, gate-major, lane-padded.
    hseq_ref  : (1, Tc, Bs, Hp)    hidden sequence output for this chunk.
    h_out_ref : (1, Bs, Hp)        final hidden state (written at t == T-1).
    c_out_ref : (1, Bs, Hp)        final cell state.
    h_sc,c_sc : (Bs, Hp) fp32      recurrence carry across chunks (VMEM).
    """
    chunk = pl.program_id(1)

    @pl.when(chunk == 0)
    def _():
        h_sc[...] = jnp.zeros_like(h_sc)
        c_sc[...] = jnp.zeros_like(c_sc)

    t_base = chunk * tc

    def step(j, carry):
        h, c = carry
        u = u_ref[...]
        pre = pre_ref[0, j].astype(jnp.float32)
        # MXU matmul with fp32 accumulation (bf16 operands when stream dtype
        # is bf16).  See TODO(synk) above about explicit weight residency.
        gates = pre + jnp.dot(h.astype(u.dtype), u,
                              preferred_element_type=jnp.float32)
        # 128-lane-aligned gate slabs -> pure VPU slicing; sigmoid lowers to
        # the EUP logistic, tanh to the EUP tanh.
        i_t = jax.nn.sigmoid(gates[:, 0 * h_pad:1 * h_pad])
        f_t = jax.nn.sigmoid(gates[:, 1 * h_pad:2 * h_pad])
        g_t = jnp.tanh(gates[:, 2 * h_pad:3 * h_pad])
        o_t = jax.nn.sigmoid(gates[:, 3 * h_pad:4 * h_pad])
        c_new = f_t * c + i_t * g_t
        h_new = o_t * jnp.tanh(c_new)
        hseq_ref[0, j] = h_new.astype(hseq_ref.dtype)

        # Write the final states exactly at the last valid global timestep,
        # so padded tail timesteps of the final chunk never touch them and no
        # extra (Bs, Hp) temporaries stay live across the loop.
        @pl.when(t_base + j == t_valid - 1)
        def _():
            h_out_ref[0] = h_new.astype(h_out_ref.dtype)
            c_out_ref[0] = c_new.astype(c_out_ref.dtype)

        return h_new, c_new

    h, c = lax.fori_loop(0, tc, step, (h_sc[...], c_sc[...]), unroll=unroll)
    h_sc[...] = h
    c_sc[...] = c


def dlstm_forward(x, params, *, time_chunk=128, batch_shards=1,
                  stream_dtype=jnp.float32, unroll=8,
                  stream_vmem_budget_bytes=24 * 1024 * 1024):
    """x: (B, T, enc_in).  Returns (hidden_seq (B, T, H), (h_T, c_T)).

    stream_dtype : storage dtype of the HBM<->VMEM streams (pre, hidden_seq,
                   U).  Use jnp.bfloat16 on v6e/v7x; compute stays fp32.
    batch_shards : leading "parallel" grid axis (set 2 on v7x, 2 TCs/chip).
    """
    W, U, b, Wd = params["W"], params["U"], params["b"], params["Wd"]
    B, T, E = x.shape
    H = Wd.shape[1]
    f32 = jnp.float32
    sd = jnp.dtype(stream_dtype)
    item = sd.itemsize

    S = max(1, int(batch_shards))
    Bs = _round_up(max(-(-B // S), 1), 8)        # per-shard sublane-aligned batch
    B_tot = S * Bs
    Hp = _round_up(max(H, 128), 128)             # lane-dense hidden dim

    # Time-chunk from the VMEM formula (double-buffered pre + hseq streams);
    # the 24 MiB default budget is safe on v7x's 64 MiB physical VMEM.
    per_step_bytes = 2 * Bs * 5 * Hp * item
    tc_cap = max(1, stream_vmem_budget_bytes // per_step_bytes)
    Tc = int(max(1, min(time_chunk, T, tc_cap)))
    num_chunks = -(-T // Tc)
    T_pad = num_chunks * Tc

    unroll_eff = 1
    for d in (2, 4, 8):
        if d <= unroll and Tc % d == 0:
            unroll_eff = d

    # ---- gate-major, lane-padded layout built on the *weights* --------------
    W_slab = jnp.zeros((E, 4, Hp), f32).at[:, :, :H].set(
        W.astype(f32).reshape(E, 4, H)).reshape(E, 4 * Hp)
    Wd_pad = jnp.zeros((E, Hp), f32).at[:, :H].set(Wd.astype(f32))
    b_slab = jnp.zeros((4, Hp), f32).at[:, :H].set(
        b.astype(f32).reshape(4, H)).reshape(4 * Hp)
    WWd = jnp.concatenate([W_slab, Wd_pad], axis=1)              # (E, 5*Hp)

    U_pad = jnp.zeros((Hp, 4, Hp), f32).at[:H, :, :H].set(
        U.astype(f32).reshape(H, 4, H)).reshape(Hp, 4 * Hp).astype(sd)

    # ---- hoisted input projection: one (T_pad*B_tot, E) @ (E, 5*Hp) matmul --
    x_tm = jnp.transpose(x, (1, 0, 2)).astype(f32)               # (T, B, E)
    x_pad = jnp.pad(x_tm, ((0, T_pad - T), (0, B_tot - B), (0, 0)))
    proj = jnp.dot(x_pad.reshape(T_pad * B_tot, E), WWd,
                   preferred_element_type=f32).reshape(T_pad, B_tot, 5 * Hp)
    gx = proj[..., :4 * Hp] + b_slab                             # x@W + b
    xwd = proj[..., 4 * Hp:]                                     # x@Wd
    # (x_t - x_{t-1}) @ Wd == xwd_t - xwd_{t-1}; exactly zero at t=0.
    od = jnp.concatenate([jnp.zeros_like(xwd[:1]), xwd[1:] - xwd[:-1]], axis=0)
    pre = gx.at[..., 3 * Hp:].add(od).astype(sd)                 # (T_pad,B_tot,4Hp)
    pre = pre.reshape(T_pad, S, Bs, 4 * Hp).transpose(1, 0, 2, 3)

    kernel = functools.partial(_dlstm_recurrence_kernel, tc=Tc, h_pad=Hp,
                               t_valid=T, unroll=unroll_eff)

    grid_spec = pltpu.PrefetchScalarGridSpec(
        num_scalar_prefetch=0,
        grid=(S, num_chunks),
        in_specs=[
            # chunk of precomputed gate pre-activations
            pl.BlockSpec((1, Tc, Bs, 4 * Hp), lambda s, c: (s, c, 0, 0)),
            # loop-invariant recurrent weights (constant index -> DMA'd once)
            pl.BlockSpec((Hp, 4 * Hp), lambda s, c: (0, 0)),
        ],
        out_specs=[
            pl.BlockSpec((1, Tc, Bs, Hp), lambda s, c: (s, c, 0, 0)),  # hseq
            pl.BlockSpec((1, Bs, Hp), lambda s, c: (s, 0, 0)),         # h_T
            pl.BlockSpec((1, Bs, Hp), lambda s, c: (s, 0, 0)),         # c_T
        ],
        scratch_shapes=[
            pltpu.VMEM((Bs, Hp), f32),   # h carry (fp32 even for bf16 streams)
            pltpu.VMEM((Bs, Hp), f32),   # c carry
        ],
    )

    # VMEM limit derived from the actual block footprint (+ headroom).
    need = (2 * Tc * Bs * 5 * Hp * item          # pre + hseq, double-buffered
            + 2 * Hp * 4 * Hp * item             # U (default double buffer)
            + 6 * Bs * Hp * 4)                   # h/c outputs + scratch
    vmem_limit = int(min(max(2 * need, 32 << 20), 96 << 20))

    hseq_pad, h_T, c_T = pl.pallas_call(
        kernel,
        grid_spec=grid_spec,
        out_shape=(
            jax.ShapeDtypeStruct((S, T_pad, Bs, Hp), sd),
            jax.ShapeDtypeStruct((S, Bs, Hp), f32),
            jax.ShapeDtypeStruct((S, Bs, Hp), f32),
        ),
        compiler_params=pltpu.CompilerParams(
            # batch shards are independent (megacore); the time recurrence is
            # strictly sequential.
            dimension_semantics=("parallel", "arbitrary"),
            vmem_limit_bytes=vmem_limit,
        ),
    )(pre, U_pad)

    hs = jnp.transpose(hseq_pad, (1, 0, 2, 3)).reshape(T_pad, B_tot, Hp)
    hidden_seq = jnp.transpose(hs[:T, :B, :H], (1, 0, 2)).astype(f32)
    h_T = h_T.reshape(B_tot, Hp)[:B, :H]
    c_T = c_T.reshape(B_tot, Hp)[:B, :H]
    return hidden_seq, (h_T, c_T)


def dlstm_reference(x, params):
    """Pure-JAX reference matching the PyTorch forward exactly."""
    W, U, b, Wd = params["W"], params["U"], params["b"], params["Wd"]
    B, T, E = x.shape
    H = Wd.shape[1]
    h = jnp.zeros((B, H), jnp.float32)
    c = jnp.zeros((B, H), jnp.float32)
    hs = []
    for t in range(T):
        x_t = x[:, t, :]
        x_d = x[:, t, :] - x[:, t - 1, :] if t > 0 else jnp.zeros_like(x_t)
        gates = x_t @ W + h @ U + b
        i_t = jax.nn.sigmoid(gates[:, :H])
        f_t = jax.nn.sigmoid(gates[:, H:2 * H])
        g_t = jnp.tanh(gates[:, 2 * H:3 * H])
        o_t = jax.nn.sigmoid(gates[:, 3 * H:] + x_d @ Wd)
        c = f_t * c + i_t * g_t
        h = o_t * jnp.tanh(c)
        hs.append(h)
    return jnp.stack(hs, axis=1), (h, c)


def init_params(key, enc_in, d_model):
    """normal(0, 1/sqrt(d_model)) for matrices, zeros for the bias."""
    k_w, k_u, k_wd = jax.random.split(key, 3)
    std = 1.0 / jnp.sqrt(jnp.float32(d_model))
    return {
        "W": jax.random.normal(k_w, (enc_in, d_model * 4), jnp.float32) * std,
        "U": jax.random.normal(k_u, (d_model, d_model * 4), jnp.float32) * std,
        "b": jnp.zeros((d_model * 4,), jnp.float32),
        "Wd": jax.random.normal(k_wd, (enc_in, d_model), jnp.float32) * std,
    }


if __name__ == "__main__":
    B, T, enc_in, d_model = 2, 8, 4, 32

    key = jax.random.PRNGKey(0)
    k_x, k_p, k_x2 = jax.random.split(key, 3)
    x = jax.random.normal(k_x, (B, T, enc_in), jnp.float32)
    params = init_params(k_p, enc_in, d_model)

    # 1) fp32 streams, single shard — tight check against the reference.
    hidden_seq, (h_T, c_T) = jax.block_until_ready(dlstm_forward(x, params))
    ref_seq, (ref_h, ref_c) = dlstm_reference(x, params)
    assert jnp.allclose(hidden_seq, ref_seq, atol=1e-4, rtol=1e-4)
    assert jnp.allclose(h_T, ref_h, atol=1e-4, rtol=1e-4)
    assert jnp.allclose(c_T, ref_c, atol=1e-4, rtol=1e-4)

    # 2) partial final chunk + 2 batch shards (megacore-ready path), fp32.
    B2, T2 = 10, 11
    x2 = jax.random.normal(k_x2, (B2, T2, enc_in), jnp.float32)
    hs2, (h2, c2) = jax.block_until_ready(
        dlstm_forward(x2, params, time_chunk=4, batch_shards=2))
    r2, (rh2, rc2) = dlstm_reference(x2, params)
    assert jnp.allclose(hs2, r2, atol=1e-4, rtol=1e-4)
    assert jnp.allclose(h2, rh2, atol=1e-4, rtol=1e-4)
    assert jnp.allclose(c2, rc2, atol=1e-4, rtol=1e-4)

    # 3) bf16 stream storage (v6e/v7x HBM/VMEM optimization) — loose check.
    hs3, _ = jax.block_until_ready(
        dlstm_forward(x, params, stream_dtype=jnp.bfloat16))
    assert float(jnp.max(jnp.abs(hs3.astype(jnp.float32) - ref_seq))) < 0.05

    print("KERNEL_OK")
</pallas_src>

<mosaic_0001>
module attributes {stable_mosaic.version = 11 : i64} {
  func.func @_dlstm_recurrence_kernel(%arg0: i32, %arg1: i32, %arg2: memref<1x8x8x512xf32, #tpu.memory_space<vmem>>, %arg3: memref<128x512xf32, #tpu.memory_space<vmem>>, %arg4: memref<1x8x8x128xf32, #tpu.memory_space<vmem>>, %arg5: memref<1x8x128xf32, #tpu.memory_space<vmem>>, %arg6: memref<1x8x128xf32, #tpu.memory_space<vmem>>, %arg7: memref<8x128xf32, #tpu.memory_space<vmem>>, %arg8: memref<8x128xf32, #tpu.memory_space<vmem>>) attributes {dimension_semantics = [#tpu.dimension_semantics<parallel>, #tpu.dimension_semantics<arbitrary>], iteration_bounds = array<i64: 1, 1>, scalar_prefetch = 0 : i64, scratch_operands = 2 : i64, tpu.core_type = #tpu.core_type<tc>, window_params = [{transform_indices = @transform_0, window_bounds = array<i64: 1, 8, 8, 512>}, {pipeline_mode = #tpu.pipeline_mode<synchronous>, transform_indices = @transform_1, window_bounds = array<i64: 128, 512>}, {transform_indices = @transform_2, window_bounds = array<i64: 1, 8, 8, 128>}, {transform_indices = @transform_3, window_bounds = array<i64: 1, 8, 128>}, {transform_indices = @transform_4, window_bounds = array<i64: 1, 8, 128>}]} {
    %c0_i32 = arith.constant 0 : i32
    %0 = arith.cmpi eq, %arg1, %c0_i32 : i32
    %1 = arith.extui %0 : i1 to i32
    %c0_i32_0 = arith.constant 0 : i32
    %2 = arith.cmpi ne, %1, %c0_i32_0 : i32
    scf.if %2 {
      %cst_121 = arith.constant 0.000000e+00 : f32
      %320 = vector.broadcast %cst_121 : f32 to vector<8x128xf32>
      %c0_122 = arith.constant 0 : index
      %c0_123 = arith.constant 0 : index
      %321 = vector.load %arg7[%c0_122, %c0_123] : memref<8x128xf32, #tpu.memory_space<vmem>>, vector<8x128xf32>
      tpu.vector_store %arg7[%c0_122, %c0_123], %320 {strides = array<i32>} : memref<8x128xf32, #tpu.memory_space<vmem>>, vector<8x128xf32>,
      %cst_124 = arith.constant 0.000000e+00 : f32
      %322 = vector.broadcast %cst_124 : f32 to vector<8x128xf32>
      %c0_125 = arith.constant 0 : index
      %c0_126 = arith.constant 0 : index
      %323 = vector.load %arg8[%c0_125, %c0_126] : memref<8x128xf32, #tpu.memory_space<vmem>>, vector<8x128xf32>
      tpu.vector_store %arg8[%c0_125, %c0_126], %322 {strides = array<i32>} : memref<8x128xf32, #tpu.memory_space<vmem>>, vector<8x128xf32>,
    } else {
    }
    %c8_i32 = arith.constant 8 : i32
    %3 = arith.muli %arg1, %c8_i32 : i32
    %c0 = arith.constant 0 : index
    %c0_1 = arith.constant 0 : index
    %4 = vector.load %arg7[%c0, %c0_1] : memref<8x128xf32, #tpu.memory_space<vmem>>, vector<8x128xf32>
    %c0_2 = arith.constant 0 : index
    %c0_3 = arith.constant 0 : index
    %5 = vector.load %arg8[%c0_2, %c0_3] : memref<8x128xf32, #tpu.memory_space<vmem>>, vector<8x128xf32>
    %c0_i32_4 = arith.constant 0 : i32
    %c0_5 = arith.constant 0 : index
    %c0_6 = arith.constant 0 : index
    %6 = vector.load %arg3[%c0_5, %c0_6] : memref<128x512xf32, #tpu.memory_space<vmem>>, vector<128x512xf32>
    %c0_7 = arith.constant 0 : index
    %7 = arith.index_cast %c0_i32_4 : i32 to index
    %c0_8 = arith.constant 0 : index
    %c0_9 = arith.constant 0 : index
    %8 = vector.load %arg2[%c0_7, %7, %c0_8, %c0_9] : memref<1x8x8x512xf32, #tpu.memory_space<vmem>>, vector<1x1x8x512xf32>
    %9 = vector.shape_cast %8 : vector<1x1x8x512xf32> to vector<8x512xf32>
    %cst = arith.constant dense<0.000000e+00> : vector<8x512xf32>
    %10 = tpu.matmul %4, %6, %cst {dimension_numbers = #tpu.dot_dimension_numbers<[1], [0], [0], [1], [0, 0, 1, 1], [], []>} : vector<8x128xf32>, vector<128x512xf32>, vector<8x512xf32> -> vector<8x512xf32>
    %11 = arith.addf %9, %10 : vector<8x512xf32>
    %12 = vector.extract_strided_slice %11 {offsets = [0, 0], sizes = [8, 128], strides = [1, 1]} : vector<8x512xf32> to vector<8x128xf32>
    %13 = arith.negf %12 : vector<8x128xf32>
    %14 = math.exp %13 : vector<8x128xf32>
    %cst_10 = arith.constant 1.000000e+00 : f32
    %15 = vector.broadcast %cst_10 : f32 to vector<8x128xf32>
    %16 = arith.addf %15, %14 : vector<8x128xf32>
    %17 = arith.divf %15, %16 : vector<8x128xf32>
    %18 = vector.extract_strided_slice %11 {offsets = [0, 128], sizes = [8, 128], strides = [1, 1]} : vector<8x512xf32> to vector<8x128xf32>
    %19 = arith.negf %18 : vector<8x128xf32>
    %20 = math.exp %19 : vector<8x128xf32>
    %cst_11 = arith.constant 1.000000e+00 : f32
    %21 = vector.broadcast %cst_11 : f32 to vector<8x128xf32>
    %22 = arith.addf %21, %20 : vector<8x128xf32>
    %23 = arith.divf %21, %22 : vector<8x128xf32>
    %24 = vector.extract_strided_slice %11 {offsets = [0, 256], sizes = [8, 128], strides = [1, 1]} : vector<8x512xf32> to vector<8x128xf32>
    %25 = math.tanh %24 : vector<8x128xf32>
    %26 = vector.extract_strided_slice %11 {offsets = [0, 384], sizes = [8, 128], strides = [1, 1]} : vector<8x512xf32> to vector<8x128xf32>
    %27 = arith.negf %26 : vector<8x128xf32>
    %28 = math.exp %27 : vector<8x128xf32>
    %cst_12 = arith.constant 1.000000e+00 : f32
    %29 = vector.broadcast %cst_12 : f32 to vector<8x128xf32>
    %30 = arith.addf %29, %28 : vector<8x128xf32>
    %31 = arith.divf %29, %30 : vector<8x128xf32>
    %32 = arith.mulf %23, %5 : vector<8x128xf32>
    %33 = arith.mulf %17, %25 : vector<8x128xf32>
    %34 = arith.addf %32, %33 : vector<8x128xf32>
    %35 = math.tanh %34 : vector<8x128xf32>
    %36 = arith.mulf %31, %35 : vector<8x128xf32>
    %c0_13 = arith.constant 0 : index
    %37 = arith.index_cast %c0_i32_4 : i32 to index
    %c0_14 = arith.constant 0 : index
    %c0_15 = arith.constant 0 : index
    %38 = vector.load %arg4[%c0_13, %37, %c0_14, %c0_15] : memref<1x8x8x128xf32, #tpu.memory_space<vmem>>, vector<1x1x8x128xf32>
    %39 = vector.shape_cast %38 : vector<1x1x8x128xf32> to vector<8x128xf32>
    %40 = vector.shape_cast %36 : vector<8x128xf32> to vector<1x1x8x128xf32>
    tpu.vector_store %arg4[%c0_13, %37, %c0_14, %c0_15], %40 {strides = array<i32>} : memref<1x8x8x128xf32, #tpu.memory_space<vmem>>, vector<1x1x8x128xf32>,
    %41 = arith.addi %3, %c0_i32_4 : i32
    %c7_i32 = arith.constant 7 : i32
    %42 = arith.cmpi eq, %41, %c7_i32 : i32
    %43 = arith.extui %42 : i1 to i32
    %c0_i32_16 = arith.constant 0 : i32
    %44 = arith.cmpi ne, %43, %c0_i32_16 : i32
    scf.if %44 {
      %c0_121 = arith.constant 0 : index
      %c0_122 = arith.constant 0 : index
      %c0_123 = arith.constant 0 : index
      %320 = vector.load %arg5[%c0_121, %c0_122, %c0_123] : memref<1x8x128xf32, #tpu.memory_space<vmem>>, vector<1x8x128xf32>
      %321 = vector.shape_cast %320 : vector<1x8x128xf32> to vector<8x128xf32>
      %322 = vector.shape_cast %36 : vector<8x128xf32> to vector<1x8x128xf32>
      tpu.vector_store %arg5[%c0_121, %c0_122, %c0_123], %322 {strides = array<i32>} : memref<1x8x128xf32, #tpu.memory_space<vmem>>, vector<1x8x128xf32>,
      %c0_124 = arith.constant 0 : index
      %c0_125 = arith.constant 0 : index
      %c0_126 = arith.constant 0 : index
      %323 = vector.load %arg6[%c0_124, %c0_125, %c0_126] : memref<1x8x128xf32, #tpu.memory_space<vmem>>, vector<1x8x128xf32>
      %324 = vector.shape_cast %323 : vector<1x8x128xf32> to vector<8x128xf32>
      %325 = vector.shape_cast %34 : vector<8x128xf32> to vector<1x8x128xf32>
      tpu.vector_store %arg6[%c0_124, %c0_125, %c0_126], %325 {strides = array<i32>} : memref<1x8x128xf32, #tpu.memory_space<vmem>>, vector<1x8x128xf32>,
    } else {
    }
    %c1_i32 = arith.constant 1 : i32
    %c0_17 = arith.constant 0 : index
    %c0_18 = arith.constant 0 : index
    %45 = vector.load %arg3[%c0_17, %c0_18] : memref<128x512xf32, #tpu.memory_space<vmem>>, vector<128x512xf32>
    %c0_19 = arith.constant 0 : index
    %46 = arith.index_cast %c1_i32 : i32 to index
    %c0_20 = arith.constant 0 : index
    %c0_21 = arith.constant 0 : index
    %47 = vector.load %arg2[%c0_19, %46, %c0_20, %c0_21] : memref<1x8x8x512xf32, #tpu.memory_space<vmem>>, vector<1x1x8x512xf32>
    %48 = vector.shape_cast %47 : vector<1x1x8x512xf32> to vector<8x512xf32>
    %cst_22 = arith.constant dense<0.000000e+00> : vector<8x512xf32>
    %49 = tpu.matmul %36, %45, %cst_22 {dimension_numbers = #tpu.dot_dimension_numbers<[1], [0], [0], [1], [0, 0, 1, 1], [], []>} : vector<8x128xf32>, vector<128x512xf32>, vector<8x512xf32> -> vector<8x512xf32>
    %50 = arith.addf %48, %49 : vector<8x512xf32>
    %51 = vector.extract_strided_slice %50 {offsets = [0, 0], sizes = [8, 128], strides = [1, 1]} : vector<8x512xf32> to vector<8x128xf32>
    %52 = arith.negf %51 : vector<8x128xf32>
    %53 = math.exp %52 : vector<8x128xf32>
    %cst_23 = arith.constant 1.000000e+00 : f32
    %54 = vector.broadcast %cst_23 : f32 to vector<8x128xf32>
    %55 = arith.addf %54, %53 : vector<8x128xf32>
    %56 = arith.divf %54, %55 : vector<8x128xf32>
    %57 = vector.extract_strided_slice %50 {offsets = [0, 128], sizes = [8, 128], strides = [1, 1]} : vector<8x512xf32> to vector<8x128xf32>
    %58 = arith.negf %57 : vector<8x128xf32>
    %59 = math.exp %58 : vector<8x128xf32>
    %cst_24 = arith.constant 1.000000e+00 : f32
    %60 = vector.broadcast %cst_24 : f32 to vector<8x128xf32>
    %61 = arith.addf %60, %59 : vector<8x128xf32>
    %62 = arith.divf %60, %61 : vector<8x128xf32>
    %63 = vector.extract_strided_slice %50 {offsets = [0, 256], sizes = [8, 128], strides = [1, 1]} : vector<8x512xf32> to vector<8x128xf32>
    %64 = math.tanh %63 : vector<8x128xf32>
    %65 = vector.extract_strided_slice %50 {offsets = [0, 384], sizes = [8, 128], strides = [1, 1]} : vector<8x512xf32> to vector<8x128xf32>
    %66 = arith.negf %65 : vector<8x128xf32>
    %67 = math.exp %66 : vector<8x128xf32>
    %cst_25 = arith.constant 1.000000e+00 : f32
    %68 = vector.broadcast %cst_25 : f32 to vector<8x128xf32>
    %69 = arith.addf %68, %67 : vector<8x128xf32>
    %70 = arith.divf %68, %69 : vector<8x128xf32>
    %71 = arith.mulf %62, %34 : vector<8x128xf32>
    %72 = arith.mulf %56, %64 : vector<8x128xf32>
    %73 = arith.addf %71, %72 : vector<8x128xf32>
    %74 = math.tanh %73 : vector<8x128xf32>
    %75 = arith.mulf %70, %74 : vector<8x128xf32>
    %c0_26 = arith.constant 0 : index
    %76 = arith.index_cast %c1_i32 : i32 to index
    %c0_27 = arith.constant 0 : index
    %c0_28 = arith.constant 0 : index
    %77 = vector.load %arg4[%c0_26, %76, %c0_27, %c0_28] : memref<1x8x8x128xf32, #tpu.memory_space<vmem>>, vector<1x1x8x128xf32>
    %78 = vector.shape_cast %77 : vector<1x1x8x128xf32> to vector<8x128xf32>
    %79 = vector.shape_cast %75 : vector<8x128xf32> to vector<1x1x8x128xf32>
    tpu.vector_store %arg4[%c0_26, %76, %c0_27, %c0_28], %79 {strides = array<i32>} : memref<1x8x8x128xf32, #tpu.memory_space<vmem>>, vector<1x1x8x128xf32>,
    %80 = arith.addi %3, %c1_i32 : i32
    %c7_i32_29 = arith.constant 7 : i32
    %81 = arith.cmpi eq, %80, %c7_i32_29 : i32
    %82 = arith.extui %81 : i1 to i32
    %c0_i32_30 = arith.constant 0 : i32
    %83 = arith.cmpi ne, %82, %c0_i32_30 : i32
    scf.if %83 {
      %c0_121 = arith.constant 0 : index
      %c0_122 = arith.constant 0 : index
      %c0_123 = arith.constant 0 : index
      %320 = vector.load %arg5[%c0_121, %c0_122, %c0_123] : memref<1x8x128xf32, #tpu.memory_space<vmem>>, vector<1x8x128xf32>
      %321 = vector.shape_cast %320 : vector<1x8x128xf32> to vector<8x128xf32>
      %322 = vector.shape_cast %75 : vector<8x128xf32> to vector<1x8x128xf32>
      tpu.vector_store %arg5[%c0_121, %c0_122, %c0_123], %322 {strides = array<i32>} : memref<1x8x128xf32, #tpu.memory_space<vmem>>, vector<1x8x128xf32>,
      %c0_124 = arith.constant 0 : index
      %c0_125 = arith.constant 0 : index
      %c0_126 = arith.constant 0 : index
      %323 = vector.load %arg6[%c0_124, %c0_125, %c0_126] : memref<1x8x128xf32, #tpu.memory_space<vmem>>, vector<1x8x128xf32>
      %324 = vector.shape_cast %323 : vector<1x8x128xf32> to vector<8x128xf32>
      %325 = vector.shape_cast %73 : vector<8x128xf32> to vector<1x8x128xf32>
      tpu.vector_store %arg6[%c0_124, %c0_125, %c0_126], %325 {strides = array<i32>} : memref<1x8x128xf32, #tpu.memory_space<vmem>>, vector<1x8x128xf32>,
    } else {
    }
    %c2_i32 = arith.constant 2 : i32
    %c0_31 = arith.constant 0 : index
    %c0_32 = arith.constant 0 : index
    %84 = vector.load %arg3[%c0_31, %c0_32] : memref<128x512xf32, #tpu.memory_space<vmem>>, vector<128x512xf32>
    %c0_33 = arith.constant 0 : index
    %85 = arith.index_cast %c2_i32 : i32 to index
    %c0_34 = arith.constant 0 : index
    %c0_35 = arith.constant 0 : index
    %86 = vector.load %arg2[%c0_33, %85, %c0_34, %c0_35] : memref<1x8x8x512xf32, #tpu.memory_space<vmem>>, vector<1x1x8x512xf32>
    %87 = vector.shape_cast %86 : vector<1x1x8x512xf32> to vector<8x512xf32>
    %cst_36 = arith.constant dense<0.000000e+00> : vector<8x512xf32>
    %88 = tpu.matmul %75, %84, %cst_36 {dimension_numbers = #tpu.dot_dimension_numbers<[1], [0], [0], [1], [0, 0, 1, 1], [], []>} : vector<8x128xf32>, vector<128x512xf32>, vector<8x512xf32> -> vector<8x512xf32>
    %89 = arith.addf %87, %88 : vector<8x512xf32>
    %90 = vector.extract_strided_slice %89 {offsets = [0, 0], sizes = [8, 128], strides = [1, 1]} : vector<8x512xf32> to vector<8x128xf32>
    %91 = arith.negf %90 : vector<8x128xf32>
    %92 = math.exp %91 : vector<8x128xf32>
    %cst_37 = arith.constant 1.000000e+00 : f32
    %93 = vector.broadcast %cst_37 : f32 to vector<8x128xf32>
    %94 = arith.addf %93, %92 : vector<8x128xf32>
    %95 = arith.divf %93, %94 : vector<8x128xf32>
    %96 = vector.extract_strided_slice %89 {offsets = [0, 128], sizes = [8, 128], strides = [1, 1]} : vector<8x512xf32> to vector<8x128xf32>
    %97 = arith.negf %96 : vector<8x128xf32>
    %98 = math.exp %97 : vector<8x128xf32>
    %cst_38 = arith.constant 1.000000e+00 : f32
    %99 = vector.broadcast %cst_38 : f32 to vector<8x128xf32>
    %100 = arith.addf %99, %98 : vector<8x128xf32>
    %101 = arith.divf %99, %100 : vector<8x128xf32>
    %102 = vector.extract_strided_slice %89 {offsets = [0, 256], sizes = [8, 128], strides = [1, 1]} : vector<8x512xf32> to vector<8x128xf32>
    %103 = math.tanh %102 : vector<8x128xf32>
    %104 = vector.extract_strided_slice %89 {offsets = [0, 384], sizes = [8, 128], strides = [1, 1]} : vector<8x512xf32> to vector<8x128xf32>
    %105 = arith.negf %104 : vector<8x128xf32>
    %106 = math.exp %105 : vector<8x128xf32>
    %cst_39 = arith.constant 1.000000e+00 : f32
    %107 = vector.broadcast %cst_39 : f32 to vector<8x128xf32>
    %108 = arith.addf %107, %106 : vector<8x128xf32>
    %109 = arith.divf %107, %108 : vector<8x128xf32>
    %110 = arith.mulf %101, %73 : vector<8x128xf32>
    %111 = arith.mulf %95, %103 : vector<8x128xf32>
    %112 = arith.addf %110, %111 : vector<8x128xf32>
    %113 = math.tanh %112 : vector<8x128xf32>
    %114 = arith.mulf %109, %113 : vector<8x128xf32>
    %c0_40 = arith.constant 0 : index
    %115 = arith.index_cast %c2_i32 : i32 to index
    %c0_41 = arith.constant 0 : index
    %c0_42 = arith.constant 0 : index
    %116 = vector.load %arg4[%c0_40, %115, %c0_41, %c0_42] : memref<1x8x8x128xf32, #tpu.memory_space<vmem>>, vector<1x1x8x128xf32>
    %117 = vector.shape_cast %116 : vector<1x1x8x128xf32> to vector<8x128xf32>
    %118 = vector.shape_cast %114 : vector<8x128xf32> to vector<1x1x8x128xf32>
    tpu.vector_store %arg4[%c0_40, %115, %c0_41, %c0_42], %118 {strides = array<i32>} : memref<1x8x8x128xf32, #tpu.memory_space<vmem>>, vector<1x1x8x128xf32>,
    %119 = arith.addi %3, %c2_i32 : i32
    %c7_i32_43 = arith.constant 7 : i32
    %120 = arith.cmpi eq, %119, %c7_i32_43 : i32
    %121 = arith.extui %120 : i1 to i32
    %c0_i32_44 = arith.constant 0 : i32
    %122 = arith.cmpi ne, %121, %c0_i32_44 : i32
    scf.if %122 {
      %c0_121 = arith.constant 0 : index
      %c0_122 = arith.constant 0 : index
      %c0_123 = arith.constant 0 : index
      %320 = vector.load %arg5[%c0_121, %c0_122, %c0_123] : memref<1x8x128xf32, #tpu.memory_space<vmem>>, vector<1x8x128xf32>
      %321 = vector.shape_cast %320 : vector<1x8x128xf32> to vector<8x128xf32>
      %322 = vector.shape_cast %114 : vector<8x128xf32> to vector<1x8x128xf32>
      tpu.vector_store %arg5[%c0_121, %c0_122, %c0_123], %322 {strides = array<i32>} : memref<1x8x128xf32, #tpu.memory_space<vmem>>, vector<1x8x128xf32>,
      %c0_124 = arith.constant 0 : index
      %c0_125 = arith.constant 0 : index
      %c0_126 = arith.constant 0 : index
      %323 = vector.load %arg6[%c0_124, %c0_125, %c0_126] : memref<1x8x128xf32, #tpu.memory_space<vmem>>, vector<1x8x128xf32>
      %324 = vector.shape_cast %323 : vector<1x8x128xf32> to vector<8x128xf32>
      %325 = vector.shape_cast %112 : vector<8x128xf32> to vector<1x8x128xf32>
      tpu.vector_store %arg6[%c0_124, %c0_125, %c0_126], %325 {strides = array<i32>} : memref<1x8x128xf32, #tpu.memory_space<vmem>>, vector<1x8x128xf32>,
    } else {
    }
    %c3_i32 = arith.constant 3 : i32
    %c0_45 = arith.constant 0 : index
    %c0_46 = arith.constant 0 : index
    %123 = vector.load %arg3[%c0_45, %c0_46] : memref<128x512xf32, #tpu.memory_space<vmem>>, vector<128x512xf32>
    %c0_47 = arith.constant 0 : index
    %124 = arith.index_cast %c3_i32 : i32 to index
    %c0_48 = arith.constant 0 : index
    %c0_49 = arith.constant 0 : index
    %125 = vector.load %arg2[%c0_47, %124, %c0_48, %c0_49] : memref<1x8x8x512xf32, #tpu.memory_space<vmem>>, vector<1x1x8x512xf32>
    %126 = vector.shape_cast %125 : vector<1x1x8x512xf32> to vector<8x512xf32>
    %cst_50 = arith.constant dense<0.000000e+00> : vector<8x512xf32>
    %127 = tpu.matmul %114, %123, %cst_50 {dimension_numbers = #tpu.dot_dimension_numbers<[1], [0], [0], [1], [0, 0, 1, 1], [], []>} : vector<8x128xf32>, vector<128x512xf32>, vector<8x512xf32> -> vector<8x512xf32>
    %128 = arith.addf %126, %127 : vector<8x512xf32>
    %129 = vector.extract_strided_slice %128 {offsets = [0, 0], sizes = [8, 128], strides = [1, 1]} : vector<8x512xf32> to vector<8x128xf32>
    %130 = arith.negf %129 : vector<8x128xf32>
    %131 = math.exp %130 : vector<8x128xf32>
    %cst_51 = arith.constant 1.000000e+00 : f32
    %132 = vector.broadcast %cst_51 : f32 to vector<8x128xf32>
    %133 = arith.addf %132, %131 : vector<8x128xf32>
    %134 = arith.divf %132, %133 : vector<8x128xf32>
    %135 = vector.extract_strided_slice %128 {offsets = [0, 128], sizes = [8, 128], strides = [1, 1]} : vector<8x512xf32> to vector<8x128xf32>
    %136 = arith.negf %135 : vector<8x128xf32>
    %137 = math.exp %136 : vector<8x128xf32>
    %cst_52 = arith.constant 1.000000e+00 : f32
    %138 = vector.broadcast %cst_52 : f32 to vector<8x128xf32>
    %139 = arith.addf %138, %137 : vector<8x128xf32>
    %140 = arith.divf %138, %139 : vector<8x128xf32>
    %141 = vector.extract_strided_slice %128 {offsets = [0, 256], sizes = [8, 128], strides = [1, 1]} : vector<8x512xf32> to vector<8x128xf32>
    %142 = math.tanh %141 : vector<8x128xf32>
    %143 = vector.extract_strided_slice %128 {offsets = [0, 384], sizes = [8, 128], strides = [1, 1]} : vector<8x512xf32> to vector<8x128xf32>
    %144 = arith.negf %143 : vector<8x128xf32>
    %145 = math.exp %144 : vector<8x128xf32>
    %cst_53 = arith.constant 1.000000e+00 : f32
    %146 = vector.broadcast %cst_53 : f32 to vector<8x128xf32>
    %147 = arith.addf %146, %145 : vector<8x128xf32>
    %148 = arith.divf %146, %147 : vector<8x128xf32>
    %149 = arith.mulf %140, %112 : vector<8x128xf32>
    %150 = arith.mulf %134, %142 : vector<8x128xf32>
    %151 = arith.addf %149, %150 : vector<8x128xf32>
    %152 = math.tanh %151 : vector<8x128xf32>
    %153 = arith.mulf %148, %152 : vector<8x128xf32>
    %c0_54 = arith.constant 0 : index
    %154 = arith.index_cast %c3_i32 : i32 to index
    %c0_55 = arith.constant 0 : index
    %c0_56 = arith.constant 0 : index
    %155 = vector.load %arg4[%c0_54, %154, %c0_55, %c0_56] : memref<1x8x8x128xf32, #tpu.memory_space<vmem>>, vector<1x1x8x128xf32>
    %156 = vector.shape_cast %155 : vector<1x1x8x128xf32> to vector<8x128xf32>
    %157 = vector.shape_cast %153 : vector<8x128xf32> to vector<1x1x8x128xf32>
    tpu.vector_store %arg4[%c0_54, %154, %c0_55, %c0_56], %157 {strides = array<i32>} : memref<1x8x8x128xf32, #tpu.memory_space<vmem>>, vector<1x1x8x128xf32>,
    %158 = arith.addi %3, %c3_i32 : i32
    %c7_i32_57 = arith.constant 7 : i32
    %159 = arith.cmpi eq, %158, %c7_i32_57 : i32
    %160 = arith.extui %159 : i1 to i32
    %c0_i32_58 = arith.constant 0 : i32
    %161 = arith.cmpi ne, %160, %c0_i32_58 : i32
    scf.if %161 {
      %c0_121 = arith.constant 0 : index
      %c0_122 = arith.constant 0 : index
      %c0_123 = arith.constant 0 : index
      %320 = vector.load %arg5[%c0_121, %c0_122, %c0_123] : memref<1x8x128xf32, #tpu.memory_space<vmem>>, vector<1x8x128xf32>
      %321 = vector.shape_cast %320 : vector<1x8x128xf32> to vector<8x128xf32>
      %322 = vector.shape_cast %153 : vector<8x128xf32> to vector<1x8x128xf32>
      tpu.vector_store %arg5[%c0_121, %c0_122, %c0_123], %322 {strides = array<i32>} : memref<1x8x128xf32, #tpu.memory_space<vmem>>, vector<1x8x128xf32>,
      %c0_124 = arith.constant 0 : index
      %c0_125 = arith.constant 0 : index
      %c0_126 = arith.constant 0 : index
      %323 = vector.load %arg6[%c0_124, %c0_125, %c0_126] : memref<1x8x128xf32, #tpu.memory_space<vmem>>, vector<1x8x128xf32>
      %324 = vector.shape_cast %323 : vector<1x8x128xf32> to vector<8x128xf32>
      %325 = vector.shape_cast %151 : vector<8x128xf32> to vector<1x8x128xf32>
      tpu.vector_store %arg6[%c0_124, %c0_125, %c0_126], %325 {strides = array<i32>} : memref<1x8x128xf32, #tpu.memory_space<vmem>>, vector<1x8x128xf32>,
    } else {
    }
    %c4_i32 = arith.constant 4 : i32
    %c0_59 = arith.constant 0 : index
    %c0_60 = arith.constant 0 : index
    %162 = vector.load %arg3[%c0_59, %c0_60] : memref<128x512xf32, #tpu.memory_space<vmem>>, vector<128x512xf32>
    %c0_61 = arith.constant 0 : index
    %163 = arith.index_cast %c4_i32 : i32 to index
    %c0_62 = arith.constant 0 : index
    %c0_63 = arith.constant 0 : index
    %164 = vector.load %arg2[%c0_61, %163, %c0_62, %c0_63] : memref<1x8x8x512xf32, #tpu.memory_space<vmem>>, vector<1x1x8x512xf32>
    %165 = vector.shape_cast %164 : vector<1x1x8x512xf32> to vector<8x512xf32>
    %cst_64 = arith.constant dense<0.000000e+00> : vector<8x512xf32>
    %166 = tpu.matmul %153, %162, %cst_64 {dimension_numbers = #tpu.dot_dimension_numbers<[1], [0], [0], [1], [0, 0, 1, 1], [], []>} : vector<8x128xf32>, vector<128x512xf32>, vector<8x512xf32> -> vector<8x512xf32>
    %167 = arith.addf %165, %166 : vector<8x512xf32>
    %168 = vector.extract_strided_slice %167 {offsets = [0, 0], sizes = [8, 128], strides = [1, 1]} : vector<8x512xf32> to vector<8x128xf32>
    %169 = arith.negf %168 : vector<8x128xf32>
    %170 = math.exp %169 : vector<8x128xf32>
    %cst_65 = arith.constant 1.000000e+00 : f32
    %171 = vector.broadcast %cst_65 : f32 to vector<8x128xf32>
    %172 = arith.addf %171, %170 : vector<8x128xf32>
    %173 = arith.divf %171, %172 : vector<8x128xf32>
    %174 = vector.extract_strided_slice %167 {offsets = [0, 128], sizes = [8, 128], strides = [1, 1]} : vector<8x512xf32> to vector<8x128xf32>
    %175 = arith.negf %174 : vector<8x128xf32>
    %176 = math.exp %175 : vector<8x128xf32>
    %cst_66 = arith.constant 1.000000e+00 : f32
    %177 = vector.broadcast %cst_66 : f32 to vector<8x128xf32>
    %178 = arith.addf %177, %176 : vector<8x128xf32>
    %179 = arith.divf %177, %178 : vector<8x128xf32>
    %180 = vector.extract_strided_slice %167 {offsets = [0, 256], sizes = [8, 128], strides = [1, 1]} : vector<8x512xf32> to vector<8x128xf32>
    %181 = math.tanh %180 : vector<8x128xf32>
    %182 = vector.extract_strided_slice %167 {offsets = [0, 384], sizes = [8, 128], strides = [1, 1]} : vector<8x512xf32> to vector<8x128xf32>
    %183 = arith.negf %182 : vector<8x128xf32>
    %184 = math.exp %183 : vector<8x128xf32>
    %cst_67 = arith.constant 1.000000e+00 : f32
    %185 = vector.broadcast %cst_67 : f32 to vector<8x128xf32>
    %186 = arith.addf %185, %184 : vector<8x128xf32>
    %187 = arith.divf %185, %186 : vector<8x128xf32>
    %188 = arith.mulf %179, %151 : vector<8x128xf32>
    %189 = arith.mulf %173, %181 : vector<8x128xf32>
    %190 = arith.addf %188, %189 : vector<8x128xf32>
    %191 = math.tanh %190 : vector<8x128xf32>
    %192 = arith.mulf %187, %191 : vector<8x128xf32>
    %c0_68 = arith.constant 0 : index
    %193 = arith.index_cast %c4_i32 : i32 to index
    %c0_69 = arith.constant 0 : index
    %c0_70 = arith.constant 0 : index
    %194 = vector.load %arg4[%c0_68, %193, %c0_69, %c0_70] : memref<1x8x8x128xf32, #tpu.memory_space<vmem>>, vector<1x1x8x128xf32>
    %195 = vector.shape_cast %194 : vector<1x1x8x128xf32> to vector<8x128xf32>
    %196 = vector.shape_cast %192 : vector<8x128xf32> to vector<1x1x8x128xf32>
    tpu.vector_store %arg4[%c0_68, %193, %c0_69, %c0_70], %196 {strides = array<i32>} : memref<1x8x8x128xf32, #tpu.memory_space<vmem>>, vector<1x1x8x128xf32>,
    %197 = arith.addi %3, %c4_i32 : i32
    %c7_i32_71 = arith.constant 7 : i32
    %198 = arith.cmpi eq, %197, %c7_i32_71 : i32
    %199 = arith.extui %198 : i1 to i32
    %c0_i32_72 = arith.constant 0 : i32
    %200 = arith.cmpi ne, %199, %c0_i32_72 : i32
    scf.if %200 {
      %c0_121 = arith.constant 0 : index
      %c0_122 = arith.constant 0 : index
      %c0_123 = arith.constant 0 : index
      %320 = vector.load %arg5[%c0_121, %c0_122, %c0_123] : memref<1x8x128xf32, #tpu.memory_space<vmem>>, vector<1x8x128xf32>
      %321 = vector.shape_cast %320 : vector<1x8x128xf32> to vector<8x128xf32>
      %322 = vector.shape_cast %192 : vector<8x128xf32> to vector<1x8x128xf32>
      tpu.vector_store %arg5[%c0_121, %c0_122, %c0_123], %322 {strides = array<i32>} : memref<1x8x128xf32, #tpu.memory_space<vmem>>, vector<1x8x128xf32>,
      %c0_124 = arith.constant 0 : index
      %c0_125 = arith.constant 0 : index
      %c0_126 = arith.constant 0 : index
      %323 = vector.load %arg6[%c0_124, %c0_125, %c0_126] : memref<1x8x128xf32, #tpu.memory_space<vmem>>, vector<1x8x128xf32>
      %324 = vector.shape_cast %323 : vector<1x8x128xf32> to vector<8x128xf32>
      %325 = vector.shape_cast %190 : vector<8x128xf32> to vector<1x8x128xf32>
      tpu.vector_store %arg6[%c0_124, %c0_125, %c0_126], %325 {strides = array<i32>} : memref<1x8x128xf32, #tpu.memory_space<vmem>>, vector<1x8x128xf32>,
    } else {
    }
    %c5_i32 = arith.constant 5 : i32
    %c0_73 = arith.constant 0 : index
    %c0_74 = arith.constant 0 : index
    %201 = vector.load %arg3[%c0_73, %c0_74] : memref<128x512xf32, #tpu.memory_space<vmem>>, vector<128x512xf32>
    %c0_75 = arith.constant 0 : index
    %202 = arith.index_cast %c5_i32 : i32 to index
    %c0_76 = arith.constant 0 : index
    %c0_77 = arith.constant 0 : index
    %203 = vector.load %arg2[%c0_75, %202, %c0_76, %c0_77] : memref<1x8x8x512xf32, #tpu.memory_space<vmem>>, vector<1x1x8x512xf32>
    %204 = vector.shape_cast %203 : vector<1x1x8x512xf32> to vector<8x512xf32>
    %cst_78 = arith.constant dense<0.000000e+00> : vector<8x512xf32>
    %205 = tpu.matmul %192, %201, %cst_78 {dimension_numbers = #tpu.dot_dimension_numbers<[1], [0], [0], [1], [0, 0, 1, 1], [], []>} : vector<8x128xf32>, vector<128x512xf32>, vector<8x512xf32> -> vector<8x512xf32>
    %206 = arith.addf %204, %205 : vector<8x512xf32>
    %207 = vector.extract_strided_slice %206 {offsets = [0, 0], sizes = [8, 128], strides = [1, 1]} : vector<8x512xf32> to vector<8x128xf32>
    %208 = arith.negf %207 : vector<8x128xf32>
    %209 = math.exp %208 : vector<8x128xf32>
    %cst_79 = arith.constant 1.000000e+00 : f32
    %210 = vector.broadcast %cst_79 : f32 to vector<8x128xf32>
    %211 = arith.addf %210, %209 : vector<8x128xf32>
    %212 = arith.divf %210, %211 : vector<8x128xf32>
    %213 = vector.extract_strided_slice %206 {offsets = [0, 128], sizes = [8, 128], strides = [1, 1]} : vector<8x512xf32> to vector<8x128xf32>
    %214 = arith.negf %213 : vector<8x128xf32>
    %215 = math.exp %214 : vector<8x128xf32>
    %cst_80 = arith.constant 1.000000e+00 : f32
    %216 = vector.broadcast %cst_80 : f32 to vector<8x128xf32>
    %217 = arith.addf %216, %215 : vector<8x128xf32>
    %218 = arith.divf %216, %217 : vector<8x128xf32>
    %219 = vector.extract_strided_slice %206 {offsets = [0, 256], sizes = [8, 128], strides = [1, 1]} : vector<8x512xf32> to vector<8x128xf32>
    %220 = math.tanh %219 : vector<8x128xf32>
    %221 = vector.extract_strided_slice %206 {offsets = [0, 384], sizes = [8, 128], strides = [1, 1]} : vector<8x512xf32> to vector<8x128xf32>
    %222 = arith.negf %221 : vector<8x128xf32>
    %223 = math.exp %222 : vector<8x128xf32>
    %cst_81 = arith.constant 1.000000e+00 : f32
    %224 = vector.broadcast %cst_81 : f32 to vector<8x128xf32>
    %225 = arith.addf %224, %223 : vector<8x128xf32>
    %226 = arith.divf %224, %225 : vector<8x128xf32>
    %227 = arith.mulf %218, %190 : vector<8x128xf32>
    %228 = arith.mulf %212, %220 : vector<8x128xf32>
    %229 = arith.addf %227, %228 : vector<8x128xf32>
    %230 = math.tanh %229 : vector<8x128xf32>
    %231 = arith.mulf %226, %230 : vector<8x128xf32>
    %c0_82 = arith.constant 0 : index
    %232 = arith.index_cast %c5_i32 : i32 to index
    %c0_83 = arith.constant 0 : index
    %c0_84 = arith.constant 0 : index
    %233 = vector.load %arg4[%c0_82, %232, %c0_83, %c0_84] : memref<1x8x8x128xf32, #tpu.memory_space<vmem>>, vector<1x1x8x128xf32>
    %234 = vector.shape_cast %233 : vector<1x1x8x128xf32> to vector<8x128xf32>
    %235 = vector.shape_cast %231 : vector<8x128xf32> to vector<1x1x8x128xf32>
    tpu.vector_store %arg4[%c0_82, %232, %c0_83, %c0_84], %235 {strides = array<i32>} : memref<1x8x8x128xf32, #tpu.memory_space<vmem>>, vector<1x1x8x128xf32>,
    %236 = arith.addi %3, %c5_i32 : i32
    %c7_i32_85 = arith.constant 7 : i32
    %237 = arith.cmpi eq, %236, %c7_i32_85 : i32
    %238 = arith.extui %237 : i1 to i32
    %c0_i32_86 = arith.constant 0 : i32
    %239 = arith.cmpi ne, %238, %c0_i32_86 : i32
    scf.if %239 {
      %c0_121 = arith.constant 0 : index
      %c0_122 = arith.constant 0 : index
      %c0_123 = arith.constant 0 : index
      %320 = vector.load %arg5[%c0_121, %c0_122, %c0_123] : memref<1x8x128xf32, #tpu.memory_space<vmem>>, vector<1x8x128xf32>
      %321 = vector.shape_cast %320 : vector<1x8x128xf32> to vector<8x128xf32>
      %322 = vector.shape_cast %231 : vector<8x128xf32> to vector<1x8x128xf32>
      tpu.vector_store %arg5[%c0_121, %c0_122, %c0_123], %322 {strides = array<i32>} : memref<1x8x128xf32, #tpu.memory_space<vmem>>, vector<1x8x128xf32>,
      %c0_124 = arith.constant 0 : index
      %c0_125 = arith.constant 0 : index
      %c0_126 = arith.constant 0 : index
      %323 = vector.load %arg6[%c0_124, %c0_125, %c0_126] : memref<1x8x128xf32, #tpu.memory_space<vmem>>, vector<1x8x128xf32>
      %324 = vector.shape_cast %323 : vector<1x8x128xf32> to vector<8x128xf32>
      %325 = vector.shape_cast %229 : vector<8x128xf32> to vector<1x8x128xf32>
      tpu.vector_store %arg6[%c0_124, %c0_125, %c0_126], %325 {strides = array<i32>} : memref<1x8x128xf32, #tpu.memory_space<vmem>>, vector<1x8x128xf32>,
    } else {
    }
    %c6_i32 = arith.constant 6 : i32
    %c0_87 = arith.constant 0 : index
    %c0_88 = arith.constant 0 : index
    %240 = vector.load %arg3[%c0_87, %c0_88] : memref<128x512xf32, #tpu.memory_space<vmem>>, vector<128x512xf32>
    %c0_89 = arith.constant 0 : index
    %241 = arith.index_cast %c6_i32 : i32 to index
    %c0_90 = arith.constant 0 : index
    %c0_91 = arith.constant 0 : index
    %242 = vector.load %arg2[%c0_89, %241, %c0_90, %c0_91] : memref<1x8x8x512xf32, #tpu.memory_space<vmem>>, vector<1x1x8x512xf32>
    %243 = vector.shape_cast %242 : vector<1x1x8x512xf32> to vector<8x512xf32>
    %cst_92 = arith.constant dense<0.000000e+00> : vector<8x512xf32>
    %244 = tpu.matmul %231, %240, %cst_92 {dimension_numbers = #tpu.dot_dimension_numbers<[1], [0], [0], [1], [0, 0, 1, 1], [], []>} : vector<8x128xf32>, vector<128x512xf32>, vector<8x512xf32> -> vector<8x512xf32>
    %245 = arith.addf %243, %244 : vector<8x512xf32>
    %246 = vector.extract_strided_slice %245 {offsets = [0, 0], sizes = [8, 128], strides = [1, 1]} : vector<8x512xf32> to vector<8x128xf32>
    %247 = arith.negf %246 : vector<8x128xf32>
    %248 = math.exp %247 : vector<8x128xf32>
    %cst_93 = arith.constant 1.000000e+00 : f32
    %249 = vector.broadcast %cst_93 : f32 to vector<8x128xf32>
    %250 = arith.addf %249, %248 : vector<8x128xf32>
    %251 = arith.divf %249, %250 : vector<8x128xf32>
    %252 = vector.extract_strided_slice %245 {offsets = [0, 128], sizes = [8, 128], strides = [1, 1]} : vector<8x512xf32> to vector<8x128xf32>
    %253 = arith.negf %252 : vector<8x128xf32>
    %254 = math.exp %253 : vector<8x128xf32>
    %cst_94 = arith.constant 1.000000e+00 : f32
    %255 = vector.broadcast %cst_94 : f32 to vector<8x128xf32>
    %256 = arith.addf %255, %254 : vector<8x128xf32>
    %257 = arith.divf %255, %256 : vector<8x128xf32>
    %258 = vector.extract_strided_slice %245 {offsets = [0, 256], sizes = [8, 128], strides = [1, 1]} : vector<8x512xf32> to vector<8x128xf32>
    %259 = math.tanh %258 : vector<8x128xf32>
    %260 = vector.extract_strided_slice %245 {offsets = [0, 384], sizes = [8, 128], strides = [1, 1]} : vector<8x512xf32> to vector<8x128xf32>
    %261 = arith.negf %260 : vector<8x128xf32>
    %262 = math.exp %261 : vector<8x128xf32>
    %cst_95 = arith.constant 1.000000e+00 : f32
    %263 = vector.broadcast %cst_95 : f32 to vector<8x128xf32>
    %264 = arith.addf %263, %262 : vector<8x128xf32>
    %265 = arith.divf %263, %264 : vector<8x128xf32>
    %266 = arith.mulf %257, %229 : vector<8x128xf32>
    %267 = arith.mulf %251, %259 : vector<8x128xf32>
    %268 = arith.addf %266, %267 : vector<8x128xf32>
    %269 = math.tanh %268 : vector<8x128xf32>
    %270 = arith.mulf %265, %269 : vector<8x128xf32>
    %c0_96 = arith.constant 0 : index
    %271 = arith.index_cast %c6_i32 : i32 to index
    %c0_97 = arith.constant 0 : index
    %c0_98 = arith.constant 0 : index
    %272 = vector.load %arg4[%c0_96, %271, %c0_97, %c0_98] : memref<1x8x8x128xf32, #tpu.memory_space<vmem>>, vector<1x1x8x128xf32>
    %273 = vector.shape_cast %272 : vector<1x1x8x128xf32> to vector<8x128xf32>
    %274 = vector.shape_cast %270 : vector<8x128xf32> to vector<1x1x8x128xf32>
    tpu.vector_store %arg4[%c0_96, %271, %c0_97, %c0_98], %274 {strides = array<i32>} : memref<1x8x8x128xf32, #tpu.memory_space<vmem>>, vector<1x1x8x128xf32>,
    %275 = arith.addi %3, %c6_i32 : i32
    %c7_i32_99 = arith.constant 7 : i32
    %276 = arith.cmpi eq, %275, %c7_i32_99 : i32
    %277 = arith.extui %276 : i1 to i32
    %c0_i32_100 = arith.constant 0 : i32
    %278 = arith.cmpi ne, %277, %c0_i32_100 : i32
    scf.if %278 {
      %c0_121 = arith.constant 0 : index
      %c0_122 = arith.constant 0 : index
      %c0_123 = arith.constant 0 : index
      %320 = vector.load %arg5[%c0_121, %c0_122, %c0_123] : memref<1x8x128xf32, #tpu.memory_space<vmem>>, vector<1x8x128xf32>
      %321 = vector.shape_cast %320 : vector<1x8x128xf32> to vector<8x128xf32>
      %322 = vector.shape_cast %270 : vector<8x128xf32> to vector<1x8x128xf32>
      tpu.vector_store %arg5[%c0_121, %c0_122, %c0_123], %322 {strides = array<i32>} : memref<1x8x128xf32, #tpu.memory_space<vmem>>, vector<1x8x128xf32>,
      %c0_124 = arith.constant 0 : index
      %c0_125 = arith.constant 0 : index
      %c0_126 = arith.constant 0 : index
      %323 = vector.load %arg6[%c0_124, %c0_125, %c0_126] : memref<1x8x128xf32, #tpu.memory_space<vmem>>, vector<1x8x128xf32>
      %324 = vector.shape_cast %323 : vector<1x8x128xf32> to vector<8x128xf32>
      %325 = vector.shape_cast %268 : vector<8x128xf32> to vector<1x8x128xf32>
      tpu.vector_store %arg6[%c0_124, %c0_125, %c0_126], %325 {strides = array<i32>} : memref<1x8x128xf32, #tpu.memory_space<vmem>>, vector<1x8x128xf32>,
    } else {
    }
    %c7_i32_101 = arith.constant 7 : i32
    %c0_102 = arith.constant 0 : index
    %c0_103 = arith.constant 0 : index
    %279 = vector.load %arg3[%c0_102, %c0_103] : memref<128x512xf32, #tpu.memory_space<vmem>>, vector<128x512xf32>
    %c0_104 = arith.constant 0 : index
    %280 = arith.index_cast %c7_i32_101 : i32 to index
    %c0_105 = arith.constant 0 : index
    %c0_106 = arith.constant 0 : index
    %281 = vector.load %arg2[%c0_104, %280, %c0_105, %c0_106] : memref<1x8x8x512xf32, #tpu.memory_space<vmem>>, vector<1x1x8x512xf32>
    %282 = vector.shape_cast %281 : vector<1x1x8x512xf32> to vector<8x512xf32>
    %cst_107 = arith.constant dense<0.000000e+00> : vector<8x512xf32>
    %283 = tpu.matmul %270, %279, %cst_107 {dimension_numbers = #tpu.dot_dimension_numbers<[1], [0], [0], [1], [0, 0, 1, 1], [], []>} : vector<8x128xf32>, vector<128x512xf32>, vector<8x512xf32> -> vector<8x512xf32>
    %284 = arith.addf %282, %283 : vector<8x512xf32>
    %285 = vector.extract_strided_slice %284 {offsets = [0, 0], sizes = [8, 128], strides = [1, 1]} : vector<8x512xf32> to vector<8x128xf32>
    %286 = arith.negf %285 : vector<8x128xf32>
    %287 = math.exp %286 : vector<8x128xf32>
    %cst_108 = arith.constant 1.000000e+00 : f32
    %288 = vector.broadcast %cst_108 : f32 to vector<8x128xf32>
    %289 = arith.addf %288, %287 : vector<8x128xf32>
    %290 = arith.divf %288, %289 : vector<8x128xf32>
    %291 = vector.extract_strided_slice %284 {offsets = [0, 128], sizes = [8, 128], strides = [1, 1]} : vector<8x512xf32> to vector<8x128xf32>
    %292 = arith.negf %291 : vector<8x128xf32>
    %293 = math.exp %292 : vector<8x128xf32>
    %cst_109 = arith.constant 1.000000e+00 : f32
    %294 = vector.broadcast %cst_109 : f32 to vector<8x128xf32>
    %295 = arith.addf %294, %293 : vector<8x128xf32>
    %296 = arith.divf %294, %295 : vector<8x128xf32>
    %297 = vector.extract_strided_slice %284 {offsets = [0, 256], sizes = [8, 128], strides = [1, 1]} : vector<8x512xf32> to vector<8x128xf32>
    %298 = math.tanh %297 : vector<8x128xf32>
    %299 = vector.extract_strided_slice %284 {offsets = [0, 384], sizes = [8, 128], strides = [1, 1]} : vector<8x512xf32> to vector<8x128xf32>
    %300 = arith.negf %299 : vector<8x128xf32>
    %301 = math.exp %300 : vector<8x128xf32>
    %cst_110 = arith.constant 1.000000e+00 : f32
    %302 = vector.broadcast %cst_110 : f32 to vector<8x128xf32>
    %303 = arith.addf %302, %301 : vector<8x128xf32>
    %304 = arith.divf %302, %303 : vector<8x128xf32>
    %305 = arith.mulf %296, %268 : vector<8x128xf32>
    %306 = arith.mulf %290, %298 : vector<8x128xf32>
    %307 = arith.addf %305, %306 : vector<8x128xf32>
    %308 = math.tanh %307 : vector<8x128xf32>
    %309 = arith.mulf %304, %308 : vector<8x128xf32>
    %c0_111 = arith.constant 0 : index
    %310 = arith.index_cast %c7_i32_101 : i32 to index
    %c0_112 = arith.constant 0 : index
    %c0_113 = arith.constant 0 : index
    %311 = vector.load %arg4[%c0_111, %310, %c0_112, %c0_113] : memref<1x8x8x128xf32, #tpu.memory_space<vmem>>, vector<1x1x8x128xf32>
    %312 = vector.shape_cast %311 : vector<1x1x8x128xf32> to vector<8x128xf32>
    %313 = vector.shape_cast %309 : vector<8x128xf32> to vector<1x1x8x128xf32>
    tpu.vector_store %arg4[%c0_111, %310, %c0_112, %c0_113], %313 {strides = array<i32>} : memref<1x8x8x128xf32, #tpu.memory_space<vmem>>, vector<1x1x8x128xf32>,
    %314 = arith.addi %3, %c7_i32_101 : i32
    %c7_i32_114 = arith.constant 7 : i32
    %315 = arith.cmpi eq, %314, %c7_i32_114 : i32
    %316 = arith.extui %315 : i1 to i32
    %c0_i32_115 = arith.constant 0 : i32
    %317 = arith.cmpi ne, %316, %c0_i32_115 : i32
    scf.if %317 {
      %c0_121 = arith.constant 0 : index
      %c0_122 = arith.constant 0 : index
      %c0_123 = arith.constant 0 : index
      %320 = vector.load %arg5[%c0_121, %c0_122, %c0_123] : memref<1x8x128xf32, #tpu.memory_space<vmem>>, vector<1x8x128xf32>
      %321 = vector.shape_cast %320 : vector<1x8x128xf32> to vector<8x128xf32>
      %322 = vector.shape_cast %309 : vector<8x128xf32> to vector<1x8x128xf32>
      tpu.vector_store %arg5[%c0_121, %c0_122, %c0_123], %322 {strides = array<i32>} : memref<1x8x128xf32, #tpu.memory_space<vmem>>, vector<1x8x128xf32>,
      %c0_124 = arith.constant 0 : index
      %c0_125 = arith.constant 0 : index
      %c0_126 = arith.constant 0 : index
      %323 = vector.load %arg6[%c0_124, %c0_125, %c0_126] : memref<1x8x128xf32, #tpu.memory_space<vmem>>, vector<1x8x128xf32>
      %324 = vector.shape_cast %323 : vector<1x8x128xf32> to vector<8x128xf32>
      %325 = vector.shape_cast %307 : vector<8x128xf32> to vector<1x8x128xf32>
      tpu.vector_store %arg6[%c0_124, %c0_125, %c0_126], %325 {strides = array<i32>} : memref<1x8x128xf32, #tpu.memory_space<vmem>>, vector<1x8x128xf32>,
    } else {
    }
    %c8_i32_116 = arith.constant 8 : i32
    %c0_117 = arith.constant 0 : index
    %c0_118 = arith.constant 0 : index
    %318 = vector.load %arg7[%c0_117, %c0_118] : memref<8x128xf32, #tpu.memory_space<vmem>>, vector<8x128xf32>
    tpu.vector_store %arg7[%c0_117, %c0_118], %309 {strides = array<i32>} : memref<8x128xf32, #tpu.memory_space<vmem>>, vector<8x128xf32>,
    %c0_119 = arith.constant 0 : index
    %c0_120 = arith.constant 0 : index
    %319 = vector.load %arg8[%c0_119, %c0_120] : memref<8x128xf32, #tpu.memory_space<vmem>>, vector<8x128xf32>
    tpu.vector_store %arg8[%c0_119, %c0_120], %307 {strides = array<i32>} : memref<8x128xf32, #tpu.memory_space<vmem>>, vector<8x128xf32>,
    return
  }
  func.func @transform_0(%arg0: i32, %arg1: i32) -> (i32, i32, i32, i32) {
    %c0_i32 = arith.constant 0 : i32
    %c0_i32_0 = arith.constant 0 : i32
    %c0_i32_1 = arith.constant 0 : i32
    return %arg0, %arg1, %c0_i32, %c0_i32_0 : i32, i32, i32, i32
  }
  func.func @transform_1(%arg0: i32, %arg1: i32) -> (i32, i32) {
    %c0_i32 = arith.constant 0 : i32
    %c0_i32_0 = arith.constant 0 : i32
    %c0_i32_1 = arith.constant 0 : i32
    return %c0_i32, %c0_i32_0 : i32, i32
  }
  func.func @transform_2(%arg0: i32, %arg1: i32) -> (i32, i32, i32, i32) {
    %c0_i32 = arith.constant 0 : i32
    %c0_i32_0 = arith.constant 0 : i32
    %c0_i32_1 = arith.constant 0 : i32
    return %arg0, %arg1, %c0_i32, %c0_i32_0 : i32, i32, i32, i32
  }
  func.func @transform_3(%arg0: i32, %arg1: i32) -> (i32, i32, i32) {
    %c0_i32 = arith.constant 0 : i32
    %c0_i32_0 = arith.constant 0 : i32
    %c0_i32_1 = arith.constant 0 : i32
    return %arg0, %c0_i32, %c0_i32_0 : i32, i32, i32
  }
  func.func @transform_4(%arg0: i32, %arg1: i32) -> (i32, i32, i32) {
    %c0_i32 = arith.constant 0 : i32
    %c0_i32_0 = arith.constant 0 : i32
    %c0_i32_1 = arith.constant 0 : i32
    return %arg0, %c0_i32, %c0_i32_0 : i32, i32, i32
  }
}

</mosaic_0001>

<bundles_post_ra>
// kernel: tpu_custom_call.1
= control target key start
LH: loop header
LB: loop body
LE: loop exit
PB: predicated region body
PF: predicated region fallthrough
CT: control target
= control target key end

     0   :  { %10 = vsyncpa [#allocation5], 0  ;;  %s3403_s0 = inlined_call_operand.hbm [shape: f32[1,8,8,512], index: 0, kind: input, shape index: {}]   ;;  %s3404_s1 = inlined_call_operand.hbm [shape: f32[128,512], index: 1, kind: input, shape index: {}]   ;;  %s3405_s2 = inlined_call_operand.hbm [shape: f32[1,8,8,128], index: 2, kind: output, shape index: {0}]   ;;  %s3406_s3 = inlined_call_operand.hbm [shape: f32[1,8,128], index: 3, kind: output, shape index: {1}]   ;;  %s3407_s4 = inlined_call_operand.hbm [shape: f32[1,8,128], index: 4, kind: output, shape index: {2}]  }
   0x1   :  { %11 = vsyncpa [#allocation8], 0 }
   0x2   :  { %12 = vsyncpa [#allocation6], 0 }
   0x3   :  { %13 = vsyncpa [#allocation11], 0  ;;  %s2873_s15 = smov [#allocation4]   ;;  %s2755_s19 = scalar_lea.hbm %s3403_s0, 4096 }
   0x4   :  { %s19_s16 = sshll.u32 %s2873_s15, 4  ;;  %p2756_p0 = scmp.ne.s32.totalorder %s3403_s0, %s2755_s19  ;;  %s20_s16 = int_to_ptr.vmem [resolvable:$true] %s19_s16 }
   0x5   :  { %p2759_p1 = scmp.lt.u32.totalorder %s2755_s19, %s3403_s0 }
   0x7   :  { %p2761_p2 = pnand %p2759_p1, %p2756_p0 }
   0x9   :  { %2764 = shalt.err (!%p2761_p2)
}
   0xa   :  { %s2765_s24 = scalar_lea.vmem %s20_s16, 4096  ;;  %p2770_p4 = scmp.lt.s32.totalorder %s20_s16, %s20_s16 }
   0xb   :  { %p2766_p3 = scmp.ne.s32.totalorder %s20_s16, %s2765_s24  ;;  %p2771_p5 = scmp.lt.s32.totalorder %s2765_s24, %s2765_s24 }
   0xd   :  { %p2772_p6 = por %p2771_p5, %p2770_p4 }
   0xf   :  { %p2773_p7 = pnand %p2772_p6, %p2766_p3 }
  0x11   :  { %2776 = shalt.err (!%p2773_p7)
}
  0x12   :  { %s2874_s25 = smov 512   ;;  %s2875_s26 = smov 32  }
  0x13   :  { %25 = dma.hbm_to_vmem [thread:$0]  %s3403_s0, 4096, %s20_s16, [#allocation5], %s2874_s25, %s2874_s25, %s2875_s26  }
  0x14   :  { %s2876_s29 = smov [#allocation7]   ;;  %s2777_s7 = scalar_lea.hbm %s3404_s1, 8192 }
  0x15   :  { %s31_s30 = sshll.u32 %s2876_s29, 4  ;;  %p2778_p8 = scmp.ne.s32.totalorder %s3404_s1, %s2777_s7  ;;  %s32_s30 = int_to_ptr.vmem [resolvable:$true] %s31_s30 }
  0x16   :  { %p2781_p9 = scmp.lt.u32.totalorder %s2777_s7, %s3404_s1 }
  0x18   :  { %p2783_p10 = pnand %p2781_p9, %p2778_p8 }
  0x1a   :  { %2786 = shalt.err (!%p2783_p10)
}
  0x1b   :  { %s2787_s12 = scalar_lea.vmem %s32_s30, 8192  ;;  %p2792_p12 = scmp.lt.s32.totalorder %s32_s30, %s32_s30 }
  0x1c   :  { %p2788_p11 = scmp.ne.s32.totalorder %s32_s30, %s2787_s12  ;;  %p2793_p13 = scmp.lt.s32.totalorder %s2787_s12, %s2787_s12 }
  0x1e   :  { %p2794_p0 = por %p2793_p13, %p2792_p12 }
  0x20   :  { %p2795_p1 = pnand %p2794_p0, %p2788_p11 }
  0x22   :  { %2798 = shalt.err (!%p2795_p1)
}
  0x23   :  { %37 = dma.hbm_to_vmem [thread:$0]  %s3404_s1, 8192, %s32_s30, [#allocation8], %s2874_s25, %s2874_s25, %s2875_s26  }
  0x24   :  { %2865 = dma.done.wait [#allocation5], 4096  }
  0x25   :  { %2866 = vsyncadd [#allocation5], 4294963200 }
  0x26   :  { %2867 = dma.done.wait [#allocation8], 8192  }
  0x27   :  { %2868 = vsyncadd [#allocation8], 4294959104  ;;  %v2877_v0 = vmov 0.0   ;;  %v54_v1 = vld [vmem:[#allocation7 + $0x8] sm:$0xff]  ;;  %v53_v3 = vld [vmem:[#allocation7] sm:$0xff]  ;;  %s2878_s1 = smov [#allocation10]  }
  0x28   :  { %185 = vmatprep.mubr.f32.mxu0 %v2877_v0  ;;  %256 = vmatprep.mubr.f32.mxu1 %v2877_v0  ;;  %v58_v2 = vld [vmem:[#allocation7 + $0x28] sm:$0xff]  ;;  %v57_v5 = vld [vmem:[#allocation7 + $0x20] sm:$0xff]  ;;  %v56_v19 = vld [vmem:[#allocation7 + $0x18] sm:$0xff]  ;;  %s2054_s14 = sshll.u32 %s2878_s1, 4  ;;  %s2879_s15 = smov [#allocation9]   ;;  %s2055_s14 = int_to_ptr.vmem [resolvable:$true] %s2054_s14 }
  0x29   :  { %v2934_v4 = vpack.c.bf16 %v58_v2, %v54_v1  ;;  %v62_v6 = vld [vmem:[#allocation7 + $0x48] sm:$0xff]  ;;  %v2936_v8 = vpack.c.bf16 %v57_v5, %v53_v3  ;;  %v61_v10 = vld [vmem:[#allocation7 + $0x40] sm:$0xff]  ;;  %v60_v20 = vld [vmem:[#allocation7 + $0x38] sm:$0xff]  ;;  %s2041_s16 = sshll.u32 %s2879_s15, 4  ;;  %s2880_s17 = smov [#allocation12]   ;;  %s3353_s16 = int_to_ptr.vmem [resolvable:$true] %s2041_s16 }
  0x2a   :  { %v66_v7 = vld [vmem:[#allocation7 + $0x68] sm:$0xff]  ;;  %v65_v11 = vld [vmem:[#allocation7 + $0x60] sm:$0xff]  ;;  %v2947_v22 = vpack.c.bf16 %v60_v20, %v56_v19  ;;  %v55_v23 = vld [vmem:[#allocation7 + $0x10] sm:$0xff]  ;;  %s2064_s18 = sshll.u32 %s2880_s17, 4  ;;  %s2799_s19 = scalar_lea.vmem %s2055_s14, 128  ;;  %s3355_s18 = int_to_ptr.vmem [resolvable:$true] %s2064_s18 }
  0x2b   :  { %v2938_v9 = vpack.c.bf16 %v66_v7, %v62_v6  ;;  %v70_v12 = vld [vmem:[#allocation7 + $0x88] sm:$0xff]  ;;  %2106 = vmatprep.subr.bf16.mxu0 %v2934_v4  ;;  %v2942_v14 = vpack.c.bf16 %v65_v11, %v61_v10  ;;  %v69_v15 = vld [vmem:[#allocation7 + $0x80] sm:$0xff]  ;;  %v59_v24 = vld [vmem:[#allocation7 + $0x30] sm:$0xff]  ;;  %p2800_p2 = scmp.ne.s32.totalorder %s2055_s14, %s2799_s19  ;;  %p2804_p3 = scmp.lt.s32.totalorder %s2055_s14, %s2055_s14 }
  0x2c   :  { %v74_v13 = vld [vmem:[#allocation7 + $0xa8] sm:$0xff]  ;;  %2108 = vmatpush1.bf16.msra.mxu0 %v2936_v8  ;;  %v73_v16 = vld [vmem:[#allocation7 + $0xa0] sm:$0xff]  ;;  %v2949_v25 = vpack.c.bf16 %v59_v24, %v55_v23  ;;  %2138 = vmatprep.subr.bf16.mxu1 %v2947_v22  ;;  %v64_v27 = vld [vmem:[#allocation7 + $0x58] sm:$0xff]  ;;  %p2805_p4 = scmp.lt.s32.totalorder %s2799_s19, %s2799_s19 }
  0x2d   :  { %2110 = vmatprep.subr.bf16.mxu0 %v2938_v9  ;;  %v2945_v17 = vpack.c.bf16 %v74_v13, %v70_v12  ;;  %v78_v18 = vld [vmem:[#allocation7 + $0xc8] sm:$0xff]  ;;  %v2952_v26 = vpack.c.bf16 %v73_v16, %v69_v15  ;;  %v68_v28 = vld [vmem:[#allocation7 + $0x78] sm:$0xff]  ;;  %v63_v29 = vld [vmem:[#allocation7 + $0x50] sm:$0xff] }
  0x2e   :  { %v82_v21 = vld [vmem:[#allocation7 + $0xe8] sm:$0xff]  ;;  %v77_v31 = vld [vmem:[#allocation7 + $0xc0] sm:$0xff]  ;;  %2140 = vmatpush1.bf16.msra.mxu1 %v2949_v25  ;;  %v2959_v33 = vpack.c.bf16 %v68_v28, %v64_v27  ;;  %v67_v34 = vld [vmem:[#allocation7 + $0x70] sm:$0xff]  ;;  %p2806_p5 = por %p2805_p4, %p2804_p3 }
  0x2f   :  { %v2956_v30 = vpack.c.bf16 %v82_v21, %v78_v18  ;;  %v81_v32 = vld [vmem:[#allocation7 + $0xe0] sm:$0xff]  ;;  %v86_v35 = vld [vmem:[#allocation7 + $0x108] sm:$0xff]  ;;  %v2961_v37 = vpack.c.bf16 %v67_v34, %v63_v29  ;;  %v72_v38 = vld [vmem:[#allocation7 + $0x98] sm:$0xff] }
  0x30   :  { %2112 = vmatpush1.bf16.msra.mxu0 %v2942_v14  ;;  %v90_v36 = vld [vmem:[#allocation7 + $0x128] sm:$0xff]  ;;  %2142 = vmatprep.subr.bf16.mxu1 %v2959_v33  ;;  %v76_v39 = vld [vmem:[#allocation7 + $0xb8] sm:$0xff]  ;;  %v71_v40 = vld [vmem:[#allocation7 + $0x90] sm:$0xff]  ;;  %v2965_v42 = vpack.c.bf16 %v81_v32, %v77_v31  ;;  %p2807_p6 = pnand %p2806_p5, %p2800_p2 }
  0x31   :  { %2114 = vmatprep.subr.bf16.mxu0 %v2945_v17  ;;  %v75_v41 = vld [vmem:[#allocation7 + $0xb0] sm:$0xff]  ;;  %v85_v43 = vld [vmem:[#allocation7 + $0x100] sm:$0xff]  ;;  %v2967_v45 = vpack.c.bf16 %v76_v39, %v72_v38  ;;  %v2970_v46 = vpack.c.bf16 %v90_v36, %v86_v35  ;;  %v94_v47 = vld [vmem:[#allocation7 + $0x148] sm:$0xff] }
  0x32   :  { %v89_v44 = vld [vmem:[#allocation7 + $0x120] sm:$0xff]  ;;  %2144 = vmatpush1.bf16.msra.mxu1 %v2961_v37  ;;  %v2973_v48 = vpack.c.bf16 %v75_v41, %v71_v40  ;;  %v80_v49 = vld [vmem:[#allocation7 + $0xd8] sm:$0xff]  ;;  %v98_v51 = vld [vmem:[#allocation7 + $0x168] sm:$0xff] }
  0x33   :  { %v84_v50 = vld [vmem:[#allocation7 + $0xf8] sm:$0xff]  ;;  %2146 = vmatprep.subr.bf16.mxu1 %v2967_v45  ;;  %v79_v53 = vld [vmem:[#allocation7 + $0xd0] sm:$0xff]  ;;  %v2979_v55 = vpack.c.bf16 %v89_v44, %v85_v43  ;;  %v2982_v58 = vpack.c.bf16 %v98_v51, %v94_v47  ;;  %v93_v59 = vld [vmem:[#allocation7 + $0x140] sm:$0xff] }
  0x34   :  { %2116 = vmatpush1.bf16.msra.mxu0 %v2952_v26  ;;  %v2976_v52 = vpack.c.bf16 %v84_v50, %v80_v49  ;;  %v83_v54 = vld [vmem:[#allocation7 + $0xf0] sm:$0xff]  ;;  %v88_v56 = vld [vmem:[#allocation7 + $0x118] sm:$0xff]  ;;  %v97_v60 = vld [vmem:[#allocation7 + $0x160] sm:$0xff] }
  0x35   :  { %2118 = vmatprep.subr.bf16.mxu0 %v2956_v30  ;;  %v92_v57 = vld [vmem:[#allocation7 + $0x138] sm:$0xff]  ;;  %v102_v61 = vld [vmem:[#allocation7 + $0x188] sm:$0xff]  ;;  %v2985_v62 = vpack.c.bf16 %v83_v54, %v79_v53  ;;  %v87_v2 = vld [vmem:[#allocation7 + $0x110] sm:$0xff]  ;;  %v2991_v7 = vpack.c.bf16 %v97_v60, %v93_v59 }
  0x36   :  { %2148 = vmatpush1.bf16.msra.mxu1 %v2973_v48  ;;  %v106_v63 = vld [vmem:[#allocation7 + $0x1a8] sm:$0xff]  ;;  %v2988_v1 = vpack.c.bf16 %v92_v57, %v88_v56  ;;  %v91_v3 = vld [vmem:[#allocation7 + $0x130] sm:$0xff]  ;;  %v96_v5 = vld [vmem:[#allocation7 + $0x158] sm:$0xff] }
  0x37   :  { %2150 = vmatprep.subr.bf16.mxu1 %v2976_v52  ;;  %v100_v6 = vld [vmem:[#allocation7 + $0x178] sm:$0xff]  ;;  %v2994_v10 = vpack.c.bf16 %v106_v63, %v102_v61  ;;  %v101_v11 = vld [vmem:[#allocation7 + $0x180] sm:$0xff]  ;;  %v110_v13 = vld [vmem:[#allocation7 + $0x1c8] sm:$0xff]  ;;  %v2997_v15 = vpack.c.bf16 %v91_v3, %v87_v2 }
  0x38   :  { %2120 = vmatpush1.bf16.msra.mxu0 %v2965_v42  ;;  %v105_v12 = vld [vmem:[#allocation7 + $0x1a0] sm:$0xff]  ;;  %v114_v16 = vld [vmem:[#allocation7 + $0x1e8] sm:$0xff]  ;;  %v3000_v18 = vpack.c.bf16 %v100_v6, %v96_v5  ;;  %v95_v19 = vld [vmem:[#allocation7 + $0x150] sm:$0xff] }
  0x39   :  { %2122 = vmatprep.subr.bf16.mxu0 %v2970_v46  ;;  %v99_v20 = vld [vmem:[#allocation7 + $0x170] sm:$0xff]  ;;  %v104_v21 = vld [vmem:[#allocation7 + $0x198] sm:$0xff]  ;;  %v3003_v24 = vpack.c.bf16 %v105_v12, %v101_v11  ;;  %v3006_v27 = vpack.c.bf16 %v114_v16, %v110_v13  ;;  %v109_v28 = vld [vmem:[#allocation7 + $0x1c0] sm:$0xff] }
  0x3a   :  { %2152 = vmatpush1.bf16.msra.mxu1 %v2985_v62  ;;  %v108_v23 = vld [vmem:[#allocation7 + $0x1b8] sm:$0xff]  ;;  %v113_v29 = vld [vmem:[#allocation7 + $0x1e0] sm:$0xff]  ;;  %v3009_v31 = vpack.c.bf16 %v99_v20, %v95_v19  ;;  %v103_v34 = vld [vmem:[#allocation7 + $0x190] sm:$0xff] }
  0x3b   :  { %2154 = vmatprep.subr.bf16.mxu1 %v2988_v1  ;;  %v3012_v32 = vpack.c.bf16 %v108_v23, %v104_v21  ;;  %v107_v35 = vld [vmem:[#allocation7 + $0x1b0] sm:$0xff]  ;;  %v112_v36 = vld [vmem:[#allocation7 + $0x1d8] sm:$0xff]  ;;  %v3015_v39 = vpack.c.bf16 %v113_v29, %v109_v28  ;;  %v117_v49 = vld [vmem:[#allocation4] sm:$0xff] }
  0x3c   :  { %2124 = vmatpush1.bf16.msra.mxu0 %v2979_v55  ;;  %v116_v38 = vld [vmem:[#allocation7 + $0x1f8] sm:$0xff]  ;;  %v3019_v40 = vpack.c.bf16 %v107_v35, %v103_v34  ;;  %v111_v43 = vld [vmem:[#allocation7 + $0x1d0] sm:$0xff]  ;;  %v118_v50 = vld [vmem:[#allocation4 + $0x8] sm:$0xff] }
  0x3d   :  { %2126 = vmatprep.subr.bf16.mxu0 %v2982_v58  ;;  %v3022_v41 = vpack.c.bf16 %v116_v38, %v112_v36  ;;  %v115_v44 = vld [vmem:[#allocation7 + $0x1f0] sm:$0xff]  ;;  %v120_v60 = vld [vmem:[#allocation4 + $0x18] sm:$0xff] }
  0x3e   :  { %2156 = vmatpush1.bf16.msra.mxu1 %v2997_v15  ;;  %v3026_v47 = vpack.c.bf16 %v115_v44, %v111_v43  ;;  %v119_v3 = vld [vmem:[#allocation4 + $0x10] sm:$0xff] }
  0x3f   :  { %2158 = vmatprep.subr.bf16.mxu1 %v3000_v18 }
  0x40   :  { %2128 = vmatpush1.bf16.msra.mxu0 %v2991_v7 }
  0x41   :  { %2130 = vmatprep.subr.bf16.mxu0 %v2994_v10 }
  0x42   :  { %2160 = vmatpush1.bf16.msra.mxu1 %v3009_v31 }
  0x43   :  { %2162 = vmatprep.subr.bf16.mxu1 %v3012_v32 }
  0x44   :  { %2132 = vmatpush1.bf16.msra.mxu0 %v3003_v24 }
  0x45   :  { %2134 = vmatprep.subr.bf16.mxu0 %v3006_v27 }
  0x46   :  { %2164 = vmatpush1.bf16.msra.mxu1 %v3019_v40 }
  0x47   :  { %2166 = vmatprep.subr.bf16.mxu1 %v3022_v41 }
  0x48   :  { %2136 = vmatpush1.bf16.msra.mxu0 %v3015_v39 }
  0x49   :  { %2170 = vmatprep.subr.bf16.mxu0 %v2934_v4 }
  0x4a   :  { %2168 = vmatpush1.bf16.msra.mxu1 %v3026_v47 }
  0x4b   :  { %186 = vmatmul.mubr.f32.vlgmr.msra.gmra.mrb[0].mxu0 %v2877_v0  ;;  %2202 = vmatprep.subr.bf16.mxu1 %v2947_v22 }
  0x4c   :  { %2172 = vmatpush1.bf16.msra.mxu0 %v2936_v8  ;;  %431 = vmatprep.mubr.f32.mxu0 %v2877_v0 }
  0x4d   :  { %2174 = vmatprep.subr.bf16.mxu0 %v2938_v9  ;;  %257 = vmatmul.mubr.f32.vlgmr.msra.gmra.mrb[0].mxu1 %v2877_v0 }
  0x4e   :  { %2204 = vmatpush1.bf16.msra.mxu1 %v2949_v25  ;;  %502 = vmatprep.mubr.f32.mxu1 %v2877_v0 }
  0x4f   :  { %2206 = vmatprep.subr.bf16.mxu1 %v2959_v33 }
  0x50   :  { %2176 = vmatpush1.bf16.msra.mxu0 %v2942_v14 }
  0x51   :  { %2178 = vmatprep.subr.bf16.mxu0 %v2945_v17 }
  0x52   :  { %2208 = vmatpush1.bf16.msra.mxu1 %v2961_v37 }
  0x53   :  { %2210 = vmatprep.subr.bf16.mxu1 %v2967_v45 }
  0x54   :  { %2180 = vmatpush1.bf16.msra.mxu0 %v2952_v26 }
  0x55   :  { %2182 = vmatprep.subr.bf16.mxu0 %v2956_v30 }
  0x56   :  { %2212 = vmatpush1.bf16.msra.mxu1 %v2973_v48 }
  0x57   :  { %2214 = vmatprep.subr.bf16.mxu1 %v2976_v52 }
  0x58   :  { %2184 = vmatpush1.bf16.msra.mxu0 %v2965_v42 }
  0x59   :  { %2186 = vmatprep.subr.bf16.mxu0 %v2970_v46 }
  0x5a   :  { %2216 = vmatpush1.bf16.msra.mxu1 %v2985_v62 }
  0x5b   :  { %2218 = vmatprep.subr.bf16.mxu1 %v2988_v1 }
  0x5c   :  { %2188 = vmatpush1.bf16.msra.mxu0 %v2979_v55 }
  0x5d   :  { %2190 = vmatprep.subr.bf16.mxu0 %v2982_v58 }
  0x5e   :  { %2220 = vmatpush1.bf16.msra.mxu1 %v2997_v15 }
  0x5f   :  { %2222 = vmatprep.subr.bf16.mxu1 %v3000_v18 }
  0x60   :  { %2192 = vmatpush1.bf16.msra.mxu0 %v2991_v7 }
  0x61   :  { %2194 = vmatprep.subr.bf16.mxu0 %v2994_v10 }
  0x62   :  { %2224 = vmatpush1.bf16.msra.mxu1 %v3009_v31 }
  0x63   :  { %2226 = vmatprep.subr.bf16.mxu1 %v3012_v32 }
  0x64   :  { %2196 = vmatpush1.bf16.msra.mxu0 %v3003_v24 }
  0x65   :  { %2198 = vmatprep.subr.bf16.mxu0 %v3006_v27 }
  0x66   :  { %2228 = vmatpush1.bf16.msra.mxu1 %v3019_v40 }
  0x67   :  { %2230 = vmatprep.subr.bf16.mxu1 %v3022_v41 }
  0x68   :  { %2200 = vmatpush1.bf16.msra.mxu0 %v3015_v39 }
  0x69   :  { %2234 = vmatprep.subr.bf16.mxu0 %v2934_v4 }
  0x6a   :  { %2232 = vmatpush1.bf16.msra.mxu1 %v3026_v47 }
  0x6b   :  { %2266 = vmatprep.subr.bf16.mxu1 %v2947_v22 }
 0x11e   :  { %v187_v51 = vpop.f32.mrb[0].mxu0 }
 0x11f   :  { %v263_v53 = vadd.f32 %v187_v51, %v117_v49  ;;  %v189_v54 = vpop.f32.mrb[1].mxu0 }
 0x120   :  { %v264_v56 = vadd.f32 %v189_v54, %v118_v50  ;;  %v258_v61 = vpop.f32.mrb[0].mxu1 }
 0x121   :  { %v2081_v57 = vmul.f32 -1.442695, %v263_v53  ;;  %v260_v63 = vpop.f32.mrb[1].mxu1  ;;  %v265_v6 = vadd.f32 %v258_v61, %v119_v3 }
 0x122   :  { %v2082_v59 = vmul.f32 -1.442695, %v264_v56  ;;  %v266_v2 = vadd.f32 %v260_v63, %v120_v60  ;;  %v366_v56 = vld [vmem:[#allocation4 + $0x38] sm:$0xff] }
 0x123   :  { %2627 = vpow2.f32 %v2081_v57  ;;  %v365_v57 = vld [vmem:[#allocation4 + $0x30] sm:$0xff] }
 0x124   :  { %2629 = vpow2.f32 %v2082_v59  ;;  %v2083_v5 = vmul.f32 -1.442695, %v266_v2 }
 0x126   :  { %2631 = vpow2.f32 %v2083_v5 }
 0x127   :  { %2633 = vtanh.f32 %v265_v6 }
 0x12d   :  { %v2628_v11 = vpop.eup %2627 }
 0x12e   :  { %v2630_v12 = vpop.eup %2629  ;;  %v270_v13 = vadd.f32 1.0, %v2628_v11 }
 0x12f   :  { %v276_v16 = vadd.f32 1.0, %v2630_v12 }
 0x130   :  { %2635 = vrcp.f32 %v270_v13  ;;  %v2632_v19 = vpop.eup %2631 }
 0x131   :  { %2637 = vrcp.f32 %v276_v16  ;;  %v2634_v20 = vpop.eup %2633  ;;  %v283_v23 = vadd.f32 1.0, %v2632_v19 }
 0x133   :  { %2639 = vrcp.f32 %v283_v23 }
 0x13a   :  { %v2636_v21 = vpop.eup %2635 }
 0x13b   :  { %v2638_v28 = vpop.eup %2637  ;;  %v287_v29 = vmul.f32 %v2636_v21, %v2634_v20 }
 0x13c   :  { %v286_v34 = vmul.f32 0.0, %v2638_v28  ;;  %v614_v28 = vld [vmem:[#allocation4 + $0x58] sm:$0xff] }
 0x13d   :  { %v2640_v36 = vpop.eup %2639 }
 0x13e   :  { %v3068_v35 = vadd.f32 %v287_v29, %v286_v34  ;;  %v613_v34 = vld [vmem:[#allocation4 + $0x50] sm:$0xff] }
 0x140   :  { %2641 = vtanh.f32 %v3068_v35 }
 0x14a   :  { %v2642_v38 = vpop.eup %2641 }
 0x14b   :  { %v290_v43 = vmul.f32 %v2642_v38, %v2640_v36 }
 0x14d   :  { %291 = vst [vmem:[#allocation9] sm:$0xff] %v290_v43  ;;  %432 = vmatmul.mubr.f32.vlgmr.msra.gmra.mrb[2].mxu0 %v290_v43  ;;  %503 = vmatmul.mubr.f32.vlgmr.msra.gmra.mrb[2].mxu1 %v290_v43 }
 0x14e   :  { %2236 = vmatpush1.bf16.msra.mxu0 %v2936_v8  ;;  %2268 = vmatpush1.bf16.msra.mxu1 %v2949_v25 }
 0x14f   :  { %2238 = vmatprep.subr.bf16.mxu0 %v2938_v9  ;;  %2270 = vmatprep.subr.bf16.mxu1 %v2959_v33 }
 0x150   :  { %679 = vmatprep.mubr.f32.mxu0 %v2877_v0  ;;  %750 = vmatprep.mubr.f32.mxu1 %v2877_v0 }
 0x152   :  { %2240 = vmatpush1.bf16.msra.mxu0 %v2942_v14  ;;  %2272 = vmatpush1.bf16.msra.mxu1 %v2961_v37 }
 0x153   :  { %2242 = vmatprep.subr.bf16.mxu0 %v2945_v17  ;;  %2274 = vmatprep.subr.bf16.mxu1 %v2967_v45 }
 0x156   :  { %2244 = vmatpush1.bf16.msra.mxu0 %v2952_v26  ;;  %2276 = vmatpush1.bf16.msra.mxu1 %v2973_v48 }
 0x157   :  { %2246 = vmatprep.subr.bf16.mxu0 %v2956_v30  ;;  %2278 = vmatprep.subr.bf16.mxu1 %v2976_v52 }
 0x15a   :  { %2248 = vmatpush1.bf16.msra.mxu0 %v2965_v42  ;;  %2280 = vmatpush1.bf16.msra.mxu1 %v2985_v62  ;;  %v363_v42 = vld [vmem:[#allocation4 + $0x20] sm:$0xff] }
 0x15b   :  { %2250 = vmatprep.subr.bf16.mxu0 %v2970_v46  ;;  %2282 = vmatprep.subr.bf16.mxu1 %v2988_v1 }
 0x15e   :  { %2252 = vmatpush1.bf16.msra.mxu0 %v2979_v55  ;;  %2284 = vmatpush1.bf16.msra.mxu1 %v2997_v15  ;;  %v364_v55 = vld [vmem:[#allocation4 + $0x28] sm:$0xff] }
 0x15f   :  { %2254 = vmatprep.subr.bf16.mxu0 %v2982_v58  ;;  %2286 = vmatprep.subr.bf16.mxu1 %v3000_v18 }
 0x162   :  { %2256 = vmatpush1.bf16.msra.mxu0 %v2991_v7  ;;  %2288 = vmatpush1.bf16.msra.mxu1 %v3009_v31 }
 0x163   :  { %2258 = vmatprep.subr.bf16.mxu0 %v2994_v10  ;;  %2290 = vmatprep.subr.bf16.mxu1 %v3012_v32 }
 0x166   :  { %2260 = vmatpush1.bf16.msra.mxu0 %v3003_v24  ;;  %2292 = vmatpush1.bf16.msra.mxu1 %v3019_v40 }
 0x167   :  { %2262 = vmatprep.subr.bf16.mxu0 %v3006_v27  ;;  %2294 = vmatprep.subr.bf16.mxu1 %v3022_v41 }
 0x16a   :  { %2264 = vmatpush1.bf16.msra.mxu0 %v3015_v39  ;;  %2296 = vmatpush1.bf16.msra.mxu1 %v3026_v47 }
 0x16b   :  { %2298 = vmatprep.subr.bf16.mxu0 %v2934_v4  ;;  %2330 = vmatprep.subr.bf16.mxu1 %v2947_v22 }
 0x220   :  { %v433_v7 = vpop.f32.mrb[2].mxu0  ;;  %v504_v44 = vpop.f32.mrb[2].mxu1 }
 0x221   :  { %v509_v49 = vadd.f32 %v433_v7, %v363_v42  ;;  %v435_v24 = vpop.f32.mrb[3].mxu0  ;;  %v506_v50 = vpop.f32.mrb[3].mxu1  ;;  %v511_v60 = vadd.f32 %v504_v44, %v365_v57  ;;  %v1043_v57 = vld [vmem:[#allocation7 + $0x8] sm:$0xff] }
 0x222   :  { %v510_v51 = vadd.f32 %v435_v24, %v364_v55  ;;  %v512_v39 = vadd.f32 %v506_v50, %v366_v56 }
 0x223   :  { %v2084_v53 = vmul.f32 -1.442695, %v509_v49 }
 0x224   :  { %v2085_v54 = vmul.f32 -1.442695, %v510_v51  ;;  %v2086_v59 = vmul.f32 -1.442695, %v512_v39 }
 0x225   :  { %2643 = vpow2.f32 %v2084_v53 }
 0x226   :  { %2645 = vpow2.f32 %v2085_v54 }
 0x227   :  { %2647 = vpow2.f32 %v2086_v59  ;;  %v1047_v59 = vld [vmem:[#allocation7 + $0x28] sm:$0xff] }
 0x228   :  { %2649 = vtanh.f32 %v511_v60  ;;  %v1045_v60 = vld [vmem:[#allocation7 + $0x18] sm:$0xff] }
 0x22f   :  { %v2644_v4 = vpop.eup %2643 }
 0x230   :  { %v2646_v61 = vpop.eup %2645  ;;  %v516_v22 = vadd.f32 1.0, %v2644_v4  ;;  %v3157_v4 = vpack.c.bf16 %v1047_v59, %v1043_v57  ;;  %v1089_v59 = vld [vmem:[#allocation7 + $0x178] sm:$0xff] }
 0x231   :  { %v522_v63 = vadd.f32 1.0, %v2646_v61  ;;  %v2648_v2 = vpop.eup %2647  ;;  %v1049_v61 = vld [vmem:[#allocation7 + $0x38] sm:$0xff] }
 0x232   :  { %2651 = vrcp.f32 %v516_v22  ;;  %v2650_v3 = vpop.eup %2649  ;;  %v529_v12 = vadd.f32 1.0, %v2648_v2  ;;  %v1042_v22 = vld [vmem:[#allocation7] sm:$0xff]  ;;  %v3159_v2 = vpack.c.bf16 %v1049_v61, %v1045_v60  ;;  %v1084_v60 = vld [vmem:[#allocation7 + $0x150] sm:$0xff] }
 0x233   :  { %2653 = vrcp.f32 %v522_v63  ;;  %v1046_v63 = vld [vmem:[#allocation7 + $0x20] sm:$0xff]  ;;  %v1088_v61 = vld [vmem:[#allocation7 + $0x170] sm:$0xff] }
 0x234   :  { %2655 = vrcp.f32 %v529_v12  ;;  %v1051_v12 = vld [vmem:[#allocation7 + $0x48] sm:$0xff] }
 0x23c   :  { %v2652_v5 = vpop.eup %2651 }
 0x23d   :  { %v2654_v6 = vpop.eup %2653  ;;  %v533_v11 = vmul.f32 %v2652_v5, %v2650_v3  ;;  %v3161_v3 = vpack.c.bf16 %v1046_v63, %v1042_v22  ;;  %v1044_v5 = vld [vmem:[#allocation7 + $0x10] sm:$0xff]  ;;  %v3217_v63 = vpack.c.bf16 %v1088_v61, %v1084_v60 }
 0x23e   :  { %v532_v13 = vmul.f32 %v2654_v6, %v3068_v35  ;;  %v2656_v19 = vpop.eup %2655  ;;  %v1048_v6 = vld [vmem:[#allocation7 + $0x30] sm:$0xff] }
 0x240   :  { %v3106_v16 = vadd.f32 %v533_v11, %v532_v13  ;;  %v3164_v11 = vpack.c.bf16 %v1048_v6, %v1044_v5  ;;  %v1055_v13 = vld [vmem:[#allocation7 + $0x68] sm:$0xff] }
 0x241   :  { %v1091_v5 = vld [vmem:[#allocation7 + $0x188] sm:$0xff] }
 0x242   :  { %2657 = vtanh.f32 %v3106_v16  ;;  %v1095_v6 = vld [vmem:[#allocation7 + $0x1a8] sm:$0xff] }
 0x24c   :  { %v2658_v20 = vpop.eup %2657 }
 0x24d   :  { %v536_v21 = vmul.f32 %v2658_v20, %v2656_v19  ;;  %v3169_v19 = vpack.c.bf16 %v1055_v13, %v1051_v12  ;;  %v1057_v20 = vld [vmem:[#allocation7 + $0x78] sm:$0xff]  ;;  %v3220_v13 = vpack.c.bf16 %v1095_v6, %v1091_v5 }
 0x24e   :  { %v1093_v12 = vld [vmem:[#allocation7 + $0x198] sm:$0xff] }
 0x24f   :  { %538 = vst [vmem:[#allocation9 + $0x8] sm:$0xff] %v536_v21  ;;  %680 = vmatmul.mubr.f32.vlgmr.msra.gmra.mrb[4].mxu0 %v536_v21  ;;  %751 = vmatmul.mubr.f32.vlgmr.msra.gmra.mrb[4].mxu1 %v536_v21  ;;  %v1050_v21 = vld [vmem:[#allocation7 + $0x40] sm:$0xff] }
 0x250   :  { %2300 = vmatpush1.bf16.msra.mxu0 %v2936_v8  ;;  %2332 = vmatpush1.bf16.msra.mxu1 %v2949_v25  ;;  %v818_v8 = vld [vmem:[#allocation7 + $0xc0] sm:$0xff] }
 0x251   :  { %2302 = vmatprep.subr.bf16.mxu0 %v2938_v9  ;;  %2334 = vmatprep.subr.bf16.mxu1 %v2959_v33  ;;  %v822_v9 = vld [vmem:[#allocation7 + $0xe0] sm:$0xff] }
 0x252   :  { %927 = vmatprep.mubr.f32.mxu0 %v2877_v0  ;;  %998 = vmatprep.mubr.f32.mxu1 %v2877_v0  ;;  %v830_v25 = vld [vmem:[#allocation7 + $0x120] sm:$0xff] }
 0x253   :  { %v838_v33 = vld [vmem:[#allocation7 + $0x160] sm:$0xff] }
 0x254   :  { %2304 = vmatpush1.bf16.msra.mxu0 %v2942_v14  ;;  %2336 = vmatpush1.bf16.msra.mxu1 %v2961_v37  ;;  %v3132_v14 = vpack.c.bf16 %v822_v9, %v818_v8  ;;  %v1054_v8 = vld [vmem:[#allocation7 + $0x60] sm:$0xff] }
 0x255   :  { %2306 = vmatprep.subr.bf16.mxu0 %v2945_v17  ;;  %2338 = vmatprep.subr.bf16.mxu1 %v2967_v45  ;;  %v826_v17 = vld [vmem:[#allocation7 + $0x100] sm:$0xff] }
 0x256   :  { %v842_v45 = vld [vmem:[#allocation7 + $0x180] sm:$0xff] }
 0x258   :  { %2308 = vmatpush1.bf16.msra.mxu0 %v2952_v26  ;;  %2340 = vmatpush1.bf16.msra.mxu1 %v2973_v48  ;;  %v3136_v26 = vpack.c.bf16 %v830_v25, %v826_v17  ;;  %v846_v48 = vld [vmem:[#allocation7 + $0x1a0] sm:$0xff]  ;;  %v3173_v17 = vpack.c.bf16 %v1054_v8, %v1050_v21  ;;  %v1052_v25 = vld [vmem:[#allocation7 + $0x50] sm:$0xff] }
 0x259   :  { %2310 = vmatprep.subr.bf16.mxu0 %v2956_v30  ;;  %2342 = vmatprep.subr.bf16.mxu1 %v2976_v52  ;;  %v834_v30 = vld [vmem:[#allocation7 + $0x140] sm:$0xff]  ;;  %v3143_v52 = vpack.c.bf16 %v846_v48, %v842_v45  ;;  %v1059_v45 = vld [vmem:[#allocation7 + $0x88] sm:$0xff]  ;;  %v1096_v21 = vld [vmem:[#allocation7 + $0x1b0] sm:$0xff] }
 0x25a   :  { %v3139_v37 = vpack.c.bf16 %v838_v33, %v834_v30  ;;  %v1056_v30 = vld [vmem:[#allocation7 + $0x70] sm:$0xff]  ;;  %v1063_v48 = vld [vmem:[#allocation7 + $0xa8] sm:$0xff] }
 0x25b   :  { %v3176_v33 = vpack.c.bf16 %v1056_v30, %v1052_v25  ;;  %v1099_v25 = vld [vmem:[#allocation7 + $0x1c8] sm:$0xff] }
 0x25c   :  { %2344 = vmatpush1.bf16.msra.mxu1 %v2985_v62  ;;  %2312 = vmatpush1.bf16.msra.mxu0 %v3132_v14  ;;  %v854_v62 = vld [vmem:[#allocation7 + $0x1e0] sm:$0xff]  ;;  %v1103_v30 = vld [vmem:[#allocation7 + $0x1e8] sm:$0xff] }
 0x25d   :  { %2346 = vmatprep.subr.bf16.mxu1 %v2988_v1  ;;  %2314 = vmatprep.subr.bf16.mxu0 %v2970_v46  ;;  %v850_v46 = vld [vmem:[#allocation7 + $0x1c0] sm:$0xff] }
 0x25e   :  { %v3147_v1 = vpack.c.bf16 %v854_v62, %v850_v46  ;;  %v1061_v46 = vld [vmem:[#allocation7 + $0x98] sm:$0xff]  ;;  %v3181_v62 = vpack.c.bf16 %v1063_v48, %v1059_v45 }
 0x25f   :  { %v1101_v45 = vld [vmem:[#allocation7 + $0x1d8] sm:$0xff] }
 0x260   :  { %2348 = vmatpush1.bf16.msra.mxu1 %v2997_v15  ;;  %2316 = vmatpush1.bf16.msra.mxu0 %v3136_v26  ;;  %v611_v15 = vld [vmem:[#allocation4 + $0x40] sm:$0xff]  ;;  %v1105_v48 = vld [vmem:[#allocation7 + $0x1f8] sm:$0xff] }
 0x261   :  { %2350 = vmatprep.subr.bf16.mxu1 %v3000_v18  ;;  %2318 = vmatprep.subr.bf16.mxu0 %v2982_v58  ;;  %v612_v58 = vld [vmem:[#allocation4 + $0x48] sm:$0xff] }
 0x264   :  { %2352 = vmatpush1.bf16.msra.mxu1 %v3009_v31  ;;  %2320 = vmatpush1.bf16.msra.mxu0 %v3139_v37 }
 0x265   :  { %2354 = vmatprep.subr.bf16.mxu1 %v3012_v32  ;;  %2322 = vmatprep.subr.bf16.mxu0 %v2994_v10 }
 0x268   :  { %2356 = vmatpush1.bf16.msra.mxu1 %v3019_v40  ;;  %2324 = vmatpush1.bf16.msra.mxu0 %v3143_v52 }
 0x269   :  { %2358 = vmatprep.subr.bf16.mxu1 %v3022_v41  ;;  %2326 = vmatprep.subr.bf16.mxu0 %v3006_v27 }
 0x26c   :  { %2360 = vmatpush1.bf16.msra.mxu1 %v3026_v47  ;;  %2328 = vmatpush1.bf16.msra.mxu0 %v3147_v1 }
 0x26d   :  { %2362 = vmatprep.subr.bf16.mxu0 %v3157_v4  ;;  %2394 = vmatprep.subr.bf16.mxu1 %v3159_v2 }
 0x322   :  { %v681_v18 = vpop.f32.mrb[4].mxu0  ;;  %v752_v31 = vpop.f32.mrb[4].mxu1 }
 0x323   :  { %v757_v32 = vadd.f32 %v681_v18, %v611_v15  ;;  %v683_v40 = vpop.f32.mrb[5].mxu0  ;;  %v754_v41 = vpop.f32.mrb[5].mxu1  ;;  %v759_v36 = vadd.f32 %v752_v31, %v613_v34  ;;  %v1065_v15 = vld [vmem:[#allocation7 + $0xb8] sm:$0xff]  ;;  %v1062_v18 = vld [vmem:[#allocation7 + $0xa0] sm:$0xff] }
 0x324   :  { %v758_v47 = vadd.f32 %v683_v40, %v612_v58  ;;  %v760_v29 = vadd.f32 %v754_v41, %v614_v28  ;;  %v1058_v58 = vld [vmem:[#allocation7 + $0x80] sm:$0xff]  ;;  %v3183_v31 = vpack.c.bf16 %v1065_v15, %v1061_v46  ;;  %v1060_v40 = vld [vmem:[#allocation7 + $0x90] sm:$0xff]  ;;  %v1069_v28 = vld [vmem:[#allocation7 + $0xd8] sm:$0xff]  ;;  %v3230_v15 = vpack.c.bf16 %v1103_v30, %v1099_v25 }
 0x325   :  { %v2087_v23 = vmul.f32 -1.442695, %v757_v32  ;;  %v3185_v32 = vpack.c.bf16 %v1062_v18, %v1058_v58  ;;  %v1064_v41 = vld [vmem:[#allocation7 + $0xb0] sm:$0xff]  ;;  %v1073_v34 = vld [vmem:[#allocation7 + $0xf8] sm:$0xff]  ;;  %v3233_v58 = vpack.c.bf16 %v1105_v48, %v1101_v45 }
 0x326   :  { %v2088_v10 = vmul.f32 -1.442695, %v758_v47  ;;  %v2089_v35 = vmul.f32 -1.442695, %v760_v29  ;;  %v3188_v47 = vpack.c.bf16 %v1064_v41, %v1060_v40  ;;  %v1100_v18 = vld [vmem:[#allocation7 + $0x1d0] sm:$0xff] }
 0x327   :  { %2659 = vpow2.f32 %v2087_v23  ;;  %v1067_v23 = vld [vmem:[#allocation7 + $0xc8] sm:$0xff]  ;;  %v1104_v40 = vld [vmem:[#allocation7 + $0x1f0] sm:$0xff] }
 0x328   :  { %2661 = vpow2.f32 %v2088_v10  ;;  %v1071_v10 = vld [vmem:[#allocation7 + $0xe8] sm:$0xff]  ;;  %v3238_v41 = vpack.c.bf16 %v1104_v40, %v1100_v18 }
 0x329   :  { %2663 = vpow2.f32 %v2089_v35  ;;  %v3193_v29 = vpack.c.bf16 %v1071_v10, %v1067_v23  ;;  %v1068_v35 = vld [vmem:[#allocation7 + $0xd0] sm:$0xff]  ;;  %v859_v23 = vld [vmem:[#allocation4 + $0x60] sm:$0xff]  ;;  %v860_v10 = vld [vmem:[#allocation4 + $0x68] sm:$0xff] }
 0x32a   :  { %2665 = vtanh.f32 %v759_v36  ;;  %v1072_v36 = vld [vmem:[#allocation7 + $0xf0] sm:$0xff] }
 0x331   :  { %v2660_v27 = vpop.eup %2659 }
 0x332   :  { %v2662_v38 = vpop.eup %2661  ;;  %v764_v43 = vadd.f32 1.0, %v2660_v27  ;;  %v3195_v27 = vpack.c.bf16 %v1073_v34, %v1069_v28 }
 0x333   :  { %v770_v42 = vadd.f32 1.0, %v2662_v38  ;;  %v2664_v55 = vpop.eup %2663  ;;  %v3197_v38 = vpack.c.bf16 %v1072_v36, %v1068_v35 }
 0x334   :  { %2667 = vrcp.f32 %v764_v43  ;;  %v2666_v7 = vpop.eup %2665  ;;  %v777_v50 = vadd.f32 1.0, %v2664_v55  ;;  %v1075_v43 = vld [vmem:[#allocation7 + $0x108] sm:$0xff]  ;;  %v1077_v55 = vld [vmem:[#allocation7 + $0x118] sm:$0xff] }
 0x335   :  { %2669 = vrcp.f32 %v770_v42  ;;  %v1079_v42 = vld [vmem:[#allocation7 + $0x128] sm:$0xff] }
 0x336   :  { %2671 = vrcp.f32 %v777_v50 }
 0x33e   :  { %v2668_v44 = vpop.eup %2667 }
 0x33f   :  { %v2670_v49 = vpop.eup %2669  ;;  %v781_v24 = vmul.f32 %v2668_v44, %v2666_v7  ;;  %v3203_v7 = vpack.c.bf16 %v1079_v42, %v1075_v43  ;;  %v1081_v44 = vld [vmem:[#allocation7 + $0x138] sm:$0xff] }
 0x340   :  { %v780_v51 = vmul.f32 %v2670_v49, %v3106_v16  ;;  %v2672_v54 = vpop.eup %2671  ;;  %v1053_v16 = vld [vmem:[#allocation7 + $0x58] sm:$0xff]  ;;  %v1076_v49 = vld [vmem:[#allocation7 + $0x110] sm:$0xff]  ;;  %v3205_v50 = vpack.c.bf16 %v1081_v44, %v1077_v55 }
 0x341   :  { %v3171_v9 = vpack.c.bf16 %v1057_v20, %v1053_v16  ;;  %v1097_v16 = vld [vmem:[#allocation7 + $0x1b8] sm:$0xff]  ;;  %v1092_v20 = vld [vmem:[#allocation7 + $0x190] sm:$0xff] }
 0x342   :  { %v3152_v53 = vadd.f32 %v781_v24, %v780_v51  ;;  %v1080_v24 = vld [vmem:[#allocation7 + $0x130] sm:$0xff]  ;;  %v3223_v8 = vpack.c.bf16 %v1097_v16, %v1093_v12  ;;  %v3228_v46 = vpack.c.bf16 %v1096_v21, %v1092_v20 }
 0x343   :  { %v3207_v51 = vpack.c.bf16 %v1080_v24, %v1076_v49  ;;  %v862_v49 = vld [vmem:[#allocation4 + $0x78] sm:$0xff] }
 0x344   :  { %2673 = vtanh.f32 %v3152_v53 }
 0x34e   :  { %v2674_v56 = vpop.eup %2673 }
 0x34f   :  { %v784_v39 = vmul.f32 %v2674_v56, %v2672_v54  ;;  %v1083_v54 = vld [vmem:[#allocation7 + $0x148] sm:$0xff] }
 0x350   :  { %v1087_v56 = vld [vmem:[#allocation7 + $0x168] sm:$0xff] }
 0x351   :  { %786 = vst [vmem:[#allocation9 + $0x10] sm:$0xff] %v784_v39  ;;  %928 = vmatmul.mubr.f32.vlgmr.msra.gmra.mrb[6].mxu0 %v784_v39  ;;  %999 = vmatmul.mubr.f32.vlgmr.msra.gmra.mrb[6].mxu1 %v784_v39  ;;  %v1085_v39 = vld [vmem:[#allocation7 + $0x158] sm:$0xff]  ;;  %v3212_v57 = vpack.c.bf16 %v1087_v56, %v1083_v54  ;;  %v861_v54 = vld [vmem:[#allocation4 + $0x70] sm:$0xff] }
 0x352   :  { %1175 = vmatprep.mubr.f32.mxu0 %v2877_v0  ;;  %1246 = vmatprep.mubr.f32.mxu1 %v2877_v0  ;;  %v3215_v22 = vpack.c.bf16 %v1089_v59, %v1085_v39 }
 0x353   :  { %2364 = vmatpush1.bf16.msra.mxu0 %v3161_v3  ;;  %2396 = vmatpush1.bf16.msra.mxu1 %v3164_v11 }
 0x354   :  { %2366 = vmatprep.subr.bf16.mxu0 %v3169_v19  ;;  %2398 = vmatprep.subr.bf16.mxu1 %v3171_v9 }
 0x357   :  { %2368 = vmatpush1.bf16.msra.mxu0 %v3173_v17  ;;  %2400 = vmatpush1.bf16.msra.mxu1 %v3176_v33 }
 0x358   :  { %2370 = vmatprep.subr.bf16.mxu0 %v3181_v62  ;;  %2402 = vmatprep.subr.bf16.mxu1 %v3183_v31 }
 0x35b   :  { %2372 = vmatpush1.bf16.msra.mxu0 %v3185_v32  ;;  %2404 = vmatpush1.bf16.msra.mxu1 %v3188_v47 }
 0x35c   :  { %2374 = vmatprep.subr.bf16.mxu0 %v3193_v29  ;;  %2406 = vmatprep.subr.bf16.mxu1 %v3195_v27 }
 0x35f   :  { %2376 = vmatpush1.bf16.msra.mxu0 %v3132_v14  ;;  %2408 = vmatpush1.bf16.msra.mxu1 %v3197_v38 }
 0x360   :  { %2378 = vmatprep.subr.bf16.mxu0 %v3203_v7  ;;  %2410 = vmatprep.subr.bf16.mxu1 %v3205_v50 }
 0x363   :  { %2380 = vmatpush1.bf16.msra.mxu0 %v3136_v26  ;;  %2412 = vmatpush1.bf16.msra.mxu1 %v3207_v51 }
 0x364   :  { %2382 = vmatprep.subr.bf16.mxu0 %v3212_v57  ;;  %2414 = vmatprep.subr.bf16.mxu1 %v3215_v22 }
 0x367   :  { %2384 = vmatpush1.bf16.msra.mxu0 %v3139_v37  ;;  %2416 = vmatpush1.bf16.msra.mxu1 %v3217_v63 }
 0x368   :  { %2386 = vmatprep.subr.bf16.mxu0 %v3220_v13  ;;  %2418 = vmatprep.subr.bf16.mxu1 %v3223_v8 }
 0x36b   :  { %2388 = vmatpush1.bf16.msra.mxu0 %v3143_v52  ;;  %2420 = vmatpush1.bf16.msra.mxu1 %v3228_v46 }
 0x36c   :  { %2390 = vmatprep.subr.bf16.mxu0 %v3230_v15  ;;  %2422 = vmatprep.subr.bf16.mxu1 %v3233_v58 }
 0x36f   :  { %2392 = vmatpush1.bf16.msra.mxu0 %v3147_v1  ;;  %2424 = vmatpush1.bf16.msra.mxu1 %v3238_v41 }
 0x370   :  { %2426 = vmatprep.subr.bf16.mxu0 %v3157_v4  ;;  %2458 = vmatprep.subr.bf16.mxu1 %v3159_v2 }
 0x424   :  { %v929_v28 = vpop.f32.mrb[6].mxu0  ;;  %v1000_v34 = vpop.f32.mrb[6].mxu1 }
 0x425   :  { %v1005_v35 = vadd.f32 %v929_v28, %v859_v23  ;;  %v931_v36 = vpop.f32.mrb[7].mxu0  ;;  %v1002_v43 = vpop.f32.mrb[7].mxu1  ;;  %v1007_v39 = vadd.f32 %v1000_v34, %v861_v54  ;;  %v1108_v23 = vld [vmem:[#allocation4 + $0x88] sm:$0xff] }
 0x426   :  { %v1006_v42 = vadd.f32 %v931_v36, %v860_v10  ;;  %v1008_v24 = vadd.f32 %v1002_v43, %v862_v49 }
 0x427   :  { %v2090_v55 = vmul.f32 -1.442695, %v1005_v35 }
 0x428   :  { %v2091_v44 = vmul.f32 -1.442695, %v1006_v42  ;;  %v2092_v56 = vmul.f32 -1.442695, %v1008_v24  ;;  %v1109_v24 = vld [vmem:[#allocation4 + $0x90] sm:$0xff] }
 0x429   :  { %2675 = vpow2.f32 %v2090_v55 }
 0x42a   :  { %2677 = vpow2.f32 %v2091_v44  ;;  %v1110_v44 = vld [vmem:[#allocation4 + $0x98] sm:$0xff] }
 0x42b   :  { %2679 = vpow2.f32 %v2092_v56 }
 0x42c   :  { %2681 = vtanh.f32 %v1007_v39 }
 0x433   :  { %v2676_v59 = vpop.eup %2675 }
 0x434   :  { %v2678_v60 = vpop.eup %2677  ;;  %v1012_v61 = vadd.f32 1.0, %v2676_v59 }
 0x435   :  { %v1018_v5 = vadd.f32 1.0, %v2678_v60  ;;  %v2680_v6 = vpop.eup %2679 }
 0x436   :  { %2683 = vrcp.f32 %v1012_v61  ;;  %v2682_v12 = vpop.eup %2681  ;;  %v1025_v25 = vadd.f32 1.0, %v2680_v6 }
 0x437   :  { %2685 = vrcp.f32 %v1018_v5 }
 0x438   :  { %2687 = vrcp.f32 %v1025_v25 }
 0x440   :  { %v2684_v16 = vpop.eup %2683 }
 0x441   :  { %v2686_v20 = vpop.eup %2685  ;;  %v1029_v21 = vmul.f32 %v2684_v16, %v2682_v12 }
 0x442   :  { %v1028_v30 = vmul.f32 %v2686_v20, %v3152_v53  ;;  %v2688_v48 = vpop.eup %2687  ;;  %v1107_v53 = vld [vmem:[#allocation4 + $0x80] sm:$0xff] }
 0x444   :  { %v3246_v45 = vadd.f32 %v1029_v21, %v1028_v30 }
 0x446   :  { %2689 = vtanh.f32 %v3246_v45 }
 0x450   :  { %v2690_v18 = vpop.eup %2689 }
 0x451   :  { %v1032_v40 = vmul.f32 %v2690_v18, %v2688_v48 }
 0x453   :  { %1034 = vst [vmem:[#allocation9 + $0x18] sm:$0xff] %v1032_v40  ;;  %1176 = vmatmul.mubr.f32.vlgmr.msra.gmra.mrb[8].mxu0 %v1032_v40  ;;  %1247 = vmatmul.mubr.f32.vlgmr.msra.gmra.mrb[8].mxu1 %v1032_v40 }
 0x454   :  { %2428 = vmatpush1.bf16.msra.mxu0 %v3161_v3  ;;  %2460 = vmatpush1.bf16.msra.mxu1 %v3164_v11 }
 0x455   :  { %2430 = vmatprep.subr.bf16.mxu0 %v3169_v19  ;;  %2462 = vmatprep.subr.bf16.mxu1 %v3171_v9 }
 0x456   :  { %1423 = vmatprep.mubr.f32.mxu0 %v2877_v0  ;;  %1494 = vmatprep.mubr.f32.mxu1 %v2877_v0 }
 0x458   :  { %2432 = vmatpush1.bf16.msra.mxu0 %v3173_v17  ;;  %2464 = vmatpush1.bf16.msra.mxu1 %v3176_v33 }
 0x459   :  { %2434 = vmatprep.subr.bf16.mxu0 %v3181_v62  ;;  %2466 = vmatprep.subr.bf16.mxu1 %v3183_v31 }
 0x45c   :  { %2436 = vmatpush1.bf16.msra.mxu0 %v3185_v32  ;;  %2468 = vmatpush1.bf16.msra.mxu1 %v3188_v47 }
 0x45d   :  { %2438 = vmatprep.subr.bf16.mxu0 %v3193_v29  ;;  %2470 = vmatprep.subr.bf16.mxu1 %v3195_v27 }
 0x460   :  { %2440 = vmatpush1.bf16.msra.mxu0 %v3132_v14  ;;  %2472 = vmatpush1.bf16.msra.mxu1 %v3197_v38 }
 0x461   :  { %2442 = vmatprep.subr.bf16.mxu0 %v3203_v7  ;;  %2474 = vmatprep.subr.bf16.mxu1 %v3205_v50 }
 0x464   :  { %2444 = vmatpush1.bf16.msra.mxu0 %v3136_v26  ;;  %2476 = vmatpush1.bf16.msra.mxu1 %v3207_v51 }
 0x465   :  { %2446 = vmatprep.subr.bf16.mxu0 %v3212_v57  ;;  %2478 = vmatprep.subr.bf16.mxu1 %v3215_v22 }
 0x468   :  { %2448 = vmatpush1.bf16.msra.mxu0 %v3139_v37  ;;  %2480 = vmatpush1.bf16.msra.mxu1 %v3217_v63 }
 0x469   :  { %2450 = vmatprep.subr.bf16.mxu0 %v3220_v13  ;;  %2482 = vmatprep.subr.bf16.mxu1 %v3223_v8 }
 0x46c   :  { %2452 = vmatpush1.bf16.msra.mxu0 %v3143_v52  ;;  %2484 = vmatpush1.bf16.msra.mxu1 %v3228_v46 }
 0x46d   :  { %2454 = vmatprep.subr.bf16.mxu0 %v3230_v15  ;;  %2486 = vmatprep.subr.bf16.mxu1 %v3233_v58 }
 0x470   :  { %2456 = vmatpush1.bf16.msra.mxu0 %v3147_v1  ;;  %2488 = vmatpush1.bf16.msra.mxu1 %v3238_v41 }
 0x471   :  { %2490 = vmatprep.subr.bf16.mxu0 %v3157_v4  ;;  %2522 = vmatprep.subr.bf16.mxu1 %v3159_v2 }
 0x526   :  { %v1177_v10 = vpop.f32.mrb[8].mxu0  ;;  %v1248_v28 = vpop.f32.mrb[8].mxu1 }
 0x527   :  { %v1253_v34 = vadd.f32 %v1177_v10, %v1107_v53  ;;  %v1179_v35 = vpop.f32.mrb[9].mxu0  ;;  %v1250_v36 = vpop.f32.mrb[9].mxu1  ;;  %v1255_v56 = vadd.f32 %v1248_v28, %v1109_v24 }
 0x528   :  { %v1254_v43 = vadd.f32 %v1179_v35, %v1108_v23  ;;  %v1256_v49 = vadd.f32 %v1250_v36, %v1110_v44  ;;  %v1358_v35 = vld [vmem:[#allocation4 + $0xb8] sm:$0xff]  ;;  %v1357_v36 = vld [vmem:[#allocation4 + $0xb0] sm:$0xff] }
 0x529   :  { %v2093_v42 = vmul.f32 -1.442695, %v1253_v34 }
 0x52a   :  { %v2094_v55 = vmul.f32 -1.442695, %v1254_v43  ;;  %v2095_v54 = vmul.f32 -1.442695, %v1256_v49 }
 0x52b   :  { %2691 = vpow2.f32 %v2093_v42 }
 0x52c   :  { %2693 = vpow2.f32 %v2094_v55 }
 0x52d   :  { %2695 = vpow2.f32 %v2095_v54 }
 0x52e   :  { %2697 = vtanh.f32 %v1255_v56 }
 0x535   :  { %v2692_v39 = vpop.eup %2691 }
 0x536   :  { %v2694_v59 = vpop.eup %2693  ;;  %v1260_v60 = vadd.f32 1.0, %v2692_v39 }
 0x537   :  { %v1266_v61 = vadd.f32 1.0, %v2694_v59  ;;  %v2696_v5 = vpop.eup %2695 }
 0x538   :  { %2699 = vrcp.f32 %v1260_v60  ;;  %v2698_v6 = vpop.eup %2697  ;;  %v1273_v21 = vadd.f32 1.0, %v2696_v5 }
 0x539   :  { %2701 = vrcp.f32 %v1266_v61 }
 0x53a   :  { %2703 = vrcp.f32 %v1273_v21  ;;  %v1605_v21 = vld [vmem:[#allocation4 + $0xd0] sm:$0xff] }
 0x542   :  { %v2700_v12 = vpop.eup %2699 }
 0x543   :  { %v2702_v16 = vpop.eup %2701  ;;  %v1277_v20 = vmul.f32 %v2700_v12, %v2698_v6 }
 0x544   :  { %v1276_v25 = vmul.f32 %v2702_v16, %v3246_v45  ;;  %v2704_v48 = vpop.eup %2703 }
 0x546   :  { %v3284_v30 = vadd.f32 %v1277_v20, %v1276_v25  ;;  %v1606_v20 = vld [vmem:[#allocation4 + $0xd8] sm:$0xff] }
 0x548   :  { %2705 = vtanh.f32 %v3284_v30 }
 0x552   :  { %v2706_v18 = vpop.eup %2705 }
 0x553   :  { %v1280_v40 = vmul.f32 %v2706_v18, %v2704_v48 }
 0x555   :  { %1282 = vst [vmem:[#allocation9 + $0x20] sm:$0xff] %v1280_v40  ;;  %1424 = vmatmul.mubr.f32.vlgmr.msra.gmra.mrb[10].mxu0 %v1280_v40  ;;  %1495 = vmatmul.mubr.f32.vlgmr.msra.gmra.mrb[10].mxu1 %v1280_v40 }
 0x556   :  { %2492 = vmatpush1.bf16.msra.mxu0 %v3161_v3  ;;  %2524 = vmatpush1.bf16.msra.mxu1 %v3164_v11 }
 0x557   :  { %2494 = vmatprep.subr.bf16.mxu0 %v3169_v19  ;;  %2526 = vmatprep.subr.bf16.mxu1 %v3171_v9 }
 0x558   :  { %1671 = vmatprep.mubr.f32.mxu0 %v2877_v0  ;;  %1742 = vmatprep.mubr.f32.mxu1 %v2877_v0 }
 0x55a   :  { %2496 = vmatpush1.bf16.msra.mxu0 %v3173_v17  ;;  %2528 = vmatpush1.bf16.msra.mxu1 %v3176_v33 }
 0x55b   :  { %2498 = vmatprep.subr.bf16.mxu0 %v3181_v62  ;;  %2530 = vmatprep.subr.bf16.mxu1 %v3183_v31 }
 0x55e   :  { %2500 = vmatpush1.bf16.msra.mxu0 %v3185_v32  ;;  %2532 = vmatpush1.bf16.msra.mxu1 %v3188_v47 }
 0x55f   :  { %2502 = vmatprep.subr.bf16.mxu0 %v3193_v29  ;;  %2534 = vmatprep.subr.bf16.mxu1 %v3195_v27 }
 0x562   :  { %2504 = vmatpush1.bf16.msra.mxu0 %v3132_v14  ;;  %2536 = vmatpush1.bf16.msra.mxu1 %v3197_v38  ;;  %v1355_v14 = vld [vmem:[#allocation4 + $0xa0] sm:$0xff] }
 0x563   :  { %2506 = vmatprep.subr.bf16.mxu0 %v3203_v7  ;;  %2538 = vmatprep.subr.bf16.mxu1 %v3205_v50 }
 0x566   :  { %2508 = vmatpush1.bf16.msra.mxu0 %v3136_v26  ;;  %2540 = vmatpush1.bf16.msra.mxu1 %v3207_v51  ;;  %v1356_v26 = vld [vmem:[#allocation4 + $0xa8] sm:$0xff] }
 0x567   :  { %2510 = vmatprep.subr.bf16.mxu0 %v3212_v57  ;;  %2542 = vmatprep.subr.bf16.mxu1 %v3215_v22 }
 0x56a   :  { %2512 = vmatpush1.bf16.msra.mxu0 %v3139_v37  ;;  %2544 = vmatpush1.bf16.msra.mxu1 %v3217_v63 }
 0x56b   :  { %2514 = vmatprep.subr.bf16.mxu0 %v3220_v13  ;;  %2546 = vmatprep.subr.bf16.mxu1 %v3223_v8 }
 0x56e   :  { %2516 = vmatpush1.bf16.msra.mxu0 %v3143_v52  ;;  %2548 = vmatpush1.bf16.msra.mxu1 %v3228_v46 }
 0x56f   :  { %2518 = vmatprep.subr.bf16.mxu0 %v3230_v15  ;;  %2550 = vmatprep.subr.bf16.mxu1 %v3233_v58 }
 0x572   :  { %2520 = vmatpush1.bf16.msra.mxu0 %v3147_v1  ;;  %2552 = vmatpush1.bf16.msra.mxu1 %v3238_v41 }
 0x573   :  { %2554 = vmatprep.subr.bf16.mxu0 %v3157_v4  ;;  %2586 = vmatprep.subr.bf16.mxu1 %v3159_v2 }
 0x628   :  { %v1425_v37 = vpop.f32.mrb[10].mxu0  ;;  %v1496_v45 = vpop.f32.mrb[10].mxu1 }
 0x629   :  { %v1501_v53 = vadd.f32 %v1425_v37, %v1355_v14  ;;  %v1427_v52 = vpop.f32.mrb[11].mxu0  ;;  %v1498_v23 = vpop.f32.mrb[11].mxu1  ;;  %v1503_v42 = vadd.f32 %v1496_v45, %v1357_v36  ;;  %v1852_v36 = vld [vmem:[#allocation4 + $0xe8] sm:$0xff] }
 0x62a   :  { %v1502_v10 = vadd.f32 %v1427_v52, %v1356_v26  ;;  %v1504_v1 = vadd.f32 %v1498_v23, %v1358_v35 }
 0x62b   :  { %v2096_v28 = vmul.f32 -1.442695, %v1501_v53 }
 0x62c   :  { %v2097_v34 = vmul.f32 -1.442695, %v1502_v10  ;;  %v2098_v43 = vmul.f32 -1.442695, %v1504_v1  ;;  %v1851_v1 = vld [vmem:[#allocation4 + $0xe0] sm:$0xff] }
 0x62d   :  { %2707 = vpow2.f32 %v2096_v28 }
 0x62e   :  { %2709 = vpow2.f32 %v2097_v34 }
 0x62f   :  { %2711 = vpow2.f32 %v2098_v43 }
 0x630   :  { %2713 = vtanh.f32 %v1503_v42 }
 0x637   :  { %v2708_v4 = vpop.eup %2707 }
 0x638   :  { %v2710_v55 = vpop.eup %2709  ;;  %v1508_v2 = vadd.f32 1.0, %v2708_v4 }
 0x639   :  { %v1514_v44 = vadd.f32 1.0, %v2710_v55  ;;  %v2712_v49 = vpop.eup %2711 }
 0x63a   :  { %2715 = vrcp.f32 %v1508_v2  ;;  %v2714_v24 = vpop.eup %2713  ;;  %v1521_v59 = vadd.f32 1.0, %v2712_v49 }
 0x63b   :  { %2717 = vrcp.f32 %v1514_v44 }
 0x63c   :  { %2719 = vrcp.f32 %v1521_v59 }
 0x644   :  { %v2716_v54 = vpop.eup %2715 }
 0x645   :  { %v2718_v56 = vpop.eup %2717  ;;  %v1525_v39 = vmul.f32 %v2716_v54, %v2714_v24  ;;  %v1854_v54 = vld [vmem:[#allocation4 + $0xf8] sm:$0xff] }
 0x646   :  { %v1524_v60 = vmul.f32 %v2718_v56, %v3284_v30  ;;  %v2720_v5 = vpop.eup %2719 }
 0x648   :  { %v3322_v61 = vadd.f32 %v1525_v39, %v1524_v60  ;;  %v1853_v39 = vld [vmem:[#allocation4 + $0xf0] sm:$0xff] }
 0x64a   :  { %2721 = vtanh.f32 %v3322_v61 }
 0x654   :  { %v2722_v6 = vpop.eup %2721 }
 0x655   :  { %v1528_v12 = vmul.f32 %v2722_v6, %v2720_v5 }
 0x657   :  { %1530 = vst [vmem:[#allocation9 + $0x28] sm:$0xff] %v1528_v12  ;;  %1672 = vmatmul.mubr.f32.vlgmr.msra.gmra.mrb[12].mxu0 %v1528_v12  ;;  %1743 = vmatmul.mubr.f32.vlgmr.msra.gmra.mrb[12].mxu1 %v1528_v12 }
 0x658   :  { %2556 = vmatpush1.bf16.msra.mxu0 %v3161_v3  ;;  %2588 = vmatpush1.bf16.msra.mxu1 %v3164_v11  ;;  %v1814_v3 = vld [vmem:[#allocation7 + $0xe0] sm:$0xff] }
 0x659   :  { %2558 = vmatprep.subr.bf16.mxu0 %v3169_v19  ;;  %2590 = vmatprep.subr.bf16.mxu1 %v3171_v9  ;;  %v1818_v19 = vld [vmem:[#allocation7 + $0x100] sm:$0xff] }
 0x65a   :  { %1919 = vmatprep.mubr.f32.mxu0 %v2877_v0  ;;  %1990 = vmatprep.mubr.f32.mxu1 %v2877_v0  ;;  %v1810_v0 = vld [vmem:[#allocation7 + $0xc0] sm:$0xff] }
 0x65b   :  { %v2567_v11 = vpack.c.bf16 %v1814_v3, %v1810_v0  ;;  %v1822_v9 = vld [vmem:[#allocation7 + $0x120] sm:$0xff] }
 0x65c   :  { %2560 = vmatpush1.bf16.msra.mxu0 %v3173_v17  ;;  %2592 = vmatpush1.bf16.msra.mxu1 %v3176_v33  ;;  %v2571_v17 = vpack.c.bf16 %v1822_v9, %v1818_v19  ;;  %v1826_v33 = vld [vmem:[#allocation7 + $0x140] sm:$0xff] }
 0x65d   :  { %2562 = vmatprep.subr.bf16.mxu0 %v3181_v62  ;;  %2594 = vmatprep.subr.bf16.mxu1 %v3183_v31  ;;  %v1830_v62 = vld [vmem:[#allocation7 + $0x160] sm:$0xff] }
 0x65e   :  { %v2575_v31 = vpack.c.bf16 %v1830_v62, %v1826_v33 }
 0x660   :  { %2564 = vmatpush1.bf16.msra.mxu0 %v3185_v32  ;;  %2596 = vmatpush1.bf16.msra.mxu1 %v3188_v47  ;;  %v1834_v32 = vld [vmem:[#allocation7 + $0x180] sm:$0xff] }
 0x661   :  { %2566 = vmatprep.subr.bf16.mxu0 %v3193_v29  ;;  %2598 = vmatprep.subr.bf16.mxu1 %v3195_v27  ;;  %v1838_v47 = vld [vmem:[#allocation7 + $0x1a0] sm:$0xff] }
 0x662   :  { %v2579_v29 = vpack.c.bf16 %v1838_v47, %v1834_v32  ;;  %v1842_v27 = vld [vmem:[#allocation7 + $0x1c0] sm:$0xff] }
 0x664   :  { %2600 = vmatpush1.bf16.msra.mxu1 %v3197_v38  ;;  %2568 = vmatpush1.bf16.msra.mxu0 %v2567_v11  ;;  %v1846_v38 = vld [vmem:[#allocation7 + $0x1e0] sm:$0xff] }
 0x665   :  { %2602 = vmatprep.subr.bf16.mxu1 %v3205_v50  ;;  %2570 = vmatprep.subr.bf16.mxu0 %v3203_v7  ;;  %v2583_v50 = vpack.c.bf16 %v1846_v38, %v1842_v27  ;;  %v1603_v7 = vld [vmem:[#allocation4 + $0xc0] sm:$0xff] }
 0x668   :  { %2604 = vmatpush1.bf16.msra.mxu1 %v3207_v51  ;;  %2572 = vmatpush1.bf16.msra.mxu0 %v2571_v17  ;;  %v1604_v51 = vld [vmem:[#allocation4 + $0xc8] sm:$0xff] }
 0x669   :  { %2606 = vmatprep.subr.bf16.mxu1 %v3215_v22  ;;  %2574 = vmatprep.subr.bf16.mxu0 %v3212_v57 }
 0x66c   :  { %2608 = vmatpush1.bf16.msra.mxu1 %v3217_v63  ;;  %2576 = vmatpush1.bf16.msra.mxu0 %v2575_v31 }
 0x66d   :  { %2610 = vmatprep.subr.bf16.mxu1 %v3223_v8  ;;  %2578 = vmatprep.subr.bf16.mxu0 %v3220_v13 }
 0x670   :  { %2612 = vmatpush1.bf16.msra.mxu1 %v3228_v46  ;;  %2580 = vmatpush1.bf16.msra.mxu0 %v2579_v29 }
 0x671   :  { %2614 = vmatprep.subr.bf16.mxu1 %v3233_v58  ;;  %2582 = vmatprep.subr.bf16.mxu0 %v3230_v15 }
 0x674   :  { %2616 = vmatpush1.bf16.msra.mxu1 %v3238_v41  ;;  %2584 = vmatpush1.bf16.msra.mxu0 %v2583_v50 }
 0x72a   :  { %v1673_v22 = vpop.f32.mrb[12].mxu0  ;;  %v1744_v63 = vpop.f32.mrb[12].mxu1 }
 0x72b   :  { %v1749_v8 = vadd.f32 %v1673_v22, %v1603_v7  ;;  %v1675_v46 = vpop.f32.mrb[13].mxu0  ;;  %v1746_v57 = vpop.f32.mrb[13].mxu1  ;;  %v1751_v30 = vadd.f32 %v1744_v63, %v1605_v21 }
 0x72c   :  { %v1750_v58 = vadd.f32 %v1675_v46, %v1604_v51  ;;  %v1752_v13 = vadd.f32 %v1746_v57, %v1606_v20 }
 0x72d   :  { %v2099_v41 = vmul.f32 -1.442695, %v1749_v8 }
 0x72e   :  { %v2100_v16 = vmul.f32 -1.442695, %v1750_v58  ;;  %v2101_v25 = vmul.f32 -1.442695, %v1752_v13 }
 0x72f   :  { %2723 = vpow2.f32 %v2099_v41 }
 0x730   :  { %2725 = vpow2.f32 %v2100_v16 }
 0x731   :  { %2727 = vpow2.f32 %v2101_v25 }
 0x732   :  { %2729 = vtanh.f32 %v1751_v30 }
 0x739   :  { %v2724_v48 = vpop.eup %2723 }
 0x73a   :  { %v2726_v15 = vpop.eup %2725  ;;  %v1756_v18 = vadd.f32 1.0, %v2724_v48 }
 0x73b   :  { %v1762_v40 = vadd.f32 1.0, %v2726_v15  ;;  %v2728_v14 = vpop.eup %2727 }
 0x73c   :  { %2731 = vrcp.f32 %v1756_v18  ;;  %v2730_v26 = vpop.eup %2729  ;;  %v1769_v52 = vadd.f32 1.0, %v2728_v14 }
 0x73d   :  { %2733 = vrcp.f32 %v1762_v40 }
 0x73e   :  { %2735 = vrcp.f32 %v1769_v52 }
 0x746   :  { %v2732_v37 = vpop.eup %2731 }
 0x747   :  { %v2734_v45 = vpop.eup %2733  ;;  %v1773_v53 = vmul.f32 %v2732_v37, %v2730_v26 }
 0x748   :  { %v1772_v23 = vmul.f32 %v2734_v45, %v3322_v61  ;;  %v2736_v28 = vpop.eup %2735 }
 0x74a   :  { %v1774_v10 = vadd.f32 %v1773_v53, %v1772_v23 }
 0x74c   :  { %2737 = vtanh.f32 %v1774_v10 }
 0x756   :  { %v2738_v34 = vpop.eup %2737 }
 0x757   :  { %v1776_v35 = vmul.f32 %v2738_v34, %v2736_v28 }
 0x759   :  { %1778 = vst [vmem:[#allocation9 + $0x30] sm:$0xff] %v1776_v35  ;;  %1920 = vmatmul.mubr.f32.vlgmr.msra.gmra.mrb[14].mxu0 %v1776_v35  ;;  %1991 = vmatmul.mubr.f32.vlgmr.msra.gmra.mrb[14].mxu1 %v1776_v35 }
 0x82c   :  { %v1921_v43 = vpop.f32.mrb[14].mxu0  ;;  %v1992_v42 = vpop.f32.mrb[14].mxu1 }
 0x82d   :  { %v1997_v4 = vadd.f32 %v1921_v43, %v1851_v1  ;;  %v1923_v55 = vpop.f32.mrb[15].mxu0  ;;  %v1994_v2 = vpop.f32.mrb[15].mxu1  ;;  %v1999_v60 = vadd.f32 %v1992_v42, %v1853_v39 }
 0x82e   :  { %v1998_v44 = vadd.f32 %v1923_v55, %v1852_v36  ;;  %v2000_v56 = vadd.f32 %v1994_v2, %v1854_v54 }
 0x82f   :  { %v2102_v49 = vmul.f32 -1.442695, %v1997_v4 }
 0x830   :  { %v2103_v24 = vmul.f32 -1.442695, %v1998_v44  ;;  %v2104_v59 = vmul.f32 -1.442695, %v2000_v56 }
 0x831   :  { %2739 = vpow2.f32 %v2102_v49 }
 0x832   :  { %2741 = vpow2.f32 %v2103_v24 }
 0x833   :  { %2743 = vpow2.f32 %v2104_v59 }
 0x834   :  { %2745 = vtanh.f32 %v1999_v60 }
 0x83b   :  { %v2740_v61 = vpop.eup %2739 }
 0x83c   :  { %v2742_v5 = vpop.eup %2741  ;;  %v2004_v6 = vadd.f32 1.0, %v2740_v61 }
 0x83d   :  { %v2010_v12 = vadd.f32 1.0, %v2742_v5  ;;  %v2744_v0 = vpop.eup %2743 }
 0x83e   :  { %2747 = vrcp.f32 %v2004_v6  ;;  %v2746_v3 = vpop.eup %2745  ;;  %v2017_v17 = vadd.f32 1.0, %v2744_v0 }
 0x83f   :  { %2749 = vrcp.f32 %v2010_v12 }
 0x840   :  { %2751 = vrcp.f32 %v2017_v17 }
 0x848   :  { %v2748_v11 = vpop.eup %2747 }
 0x849   :  { %v2750_v19 = vpop.eup %2749  ;;  %v2021_v9 = vmul.f32 %v2748_v11, %v2746_v3 }
 0x84a   :  { %v2020_v33 = vmul.f32 %v2750_v19, %v1774_v10  ;;  %v2752_v31 = vpop.eup %2751 }
 0x84c   :  { %v2022_v62 = vadd.f32 %v2021_v9, %v2020_v33 }
 0x84e   :  { %2753 = vtanh.f32 %v2022_v62  ;;  %2033 = vst [vmem:[#allocation12] sm:$0xff] %v2022_v62 }
 0x858   :  { %v2754_v32 = vpop.eup %2753 }
 0x859   :  { %v2024_v47 = vmul.f32 %v2754_v32, %v2752_v31 }
 0x85b   :  { %2026 = vst [vmem:[#allocation9 + $0x38] sm:$0xff] %v2024_v47  ;;  %2032 = vst [vmem:[#allocation10] sm:$0xff] %v2024_v47 }
 0x85c   :  { %2810 = shalt.err (!%p2807_p6)
}
 0x85d   :  { %s2811_s22 = scalar_lea.hbm %s3406_s3, 128 }
 0x85e   :  { %p2812_p7 = scmp.ne.s32.totalorder %s3406_s3, %s2811_s22  ;;  %p2815_p8 = scmp.lt.u32.totalorder %s2811_s22, %s3406_s3 }
 0x860   :  { %p2817_p9 = pnand %p2815_p8, %p2812_p7 }
 0x862   :  { %2820 = shalt.err (!%p2817_p9)
}
 0x863   :  { %2057 = dma.vmem_to_hbm [thread:$0]  %s2055_s14, 128, %s3406_s3, [#allocation11]  }
 0x864   :  { %s2821_s29 = scalar_lea.vmem %s3353_s16, 1024  ;;  %p2826_p11 = scmp.lt.s32.totalorder %s3353_s16, %s3353_s16 }
 0x865   :  { %p2822_p10 = scmp.ne.s32.totalorder %s3353_s16, %s2821_s29  ;;  %p2827_p12 = scmp.lt.s32.totalorder %s2821_s29, %s2821_s29 }
 0x867   :  { %p2828_p13 = por %p2827_p12, %p2826_p11 }
 0x869   :  { %p2829_p0 = pnand %p2828_p13, %p2822_p10 }
 0x86b   :  { %2832 = shalt.err (!%p2829_p0)
}
 0x86c   :  { %s2833_s6 = scalar_lea.hbm %s3405_s2, 1024 }
 0x86d   :  { %p2834_p1 = scmp.ne.s32.totalorder %s3405_s2, %s2833_s6  ;;  %p2837_p2 = scmp.lt.u32.totalorder %s2833_s6, %s3405_s2 }
 0x86f   :  { %p2839_p3 = pnand %p2837_p2, %p2834_p1 }
 0x871   :  { %2842 = shalt.err (!%p2839_p3)
}
 0x872   :  { %s2881_s3 = smov 128   ;;  %s2882_s11 = smov 8  }
 0x873   :  { %2047 = dma.vmem_to_hbm [thread:$0]  %s3353_s16, 1024, %s3405_s2, [#allocation6], %s2881_s3, %s2881_s3, %s2882_s11  }
 0x874   :  { %s2843_s13 = scalar_lea.vmem %s3355_s18, 128  ;;  %p2848_p5 = scmp.lt.s32.totalorder %s3355_s18, %s3355_s18 }
 0x875   :  { %p2844_p4 = scmp.ne.s32.totalorder %s3355_s18, %s2843_s13  ;;  %p2849_p6 = scmp.lt.s32.totalorder %s2843_s13, %s2843_s13 }
 0x877   :  { %p2850_p7 = por %p2849_p6, %p2848_p5 }
 0x879   :  { %p2851_p8 = pnand %p2850_p7, %p2844_p4 }
 0x87b   :  { %2854 = shalt.err (!%p2851_p8)
}
 0x87c   :  { %s2855_s15 = scalar_lea.hbm %s3407_s4, 128 }
 0x87d   :  { %p2856_p9 = scmp.ne.s32.totalorder %s3407_s4, %s2855_s15  ;;  %p2859_p10 = scmp.lt.u32.totalorder %s2855_s15, %s3407_s4 }
 0x87f   :  { %p2861_p11 = pnand %p2859_p10, %p2856_p9 }
 0x881   :  { %2864 = shalt.err (!%p2861_p11)
}
 0x882   :  { %2067 = dma.vmem_to_hbm [thread:$0]  %s3355_s18, 128, %s3407_s4, [#allocation11]  }
 0x883   :  { %2869 = dma.done.wait [#allocation6], 1024  }
 0x884   :  { %2870 = vsyncadd [#allocation6], 4294966272 }
 0x885   :  { %2871 = dma.done.wait [#allocation11], 256  }
 0x886   :  { %2872 = vsyncadd [#allocation11], 4294967040 }
 0x887   :  { %2077 = vsyncpa [#allocation5], 1 }
 0x888   :  { %2078 = vsyncpa [#allocation8], 1 }
 0x889   :  { %2079 = vsyncpa [#allocation6], 1 }
 0x88a   :  { %2080 = vsyncpa [#allocation11], 1 }

</bundles_post_ra>
